<compile_context>
chip_gen: v7x
topology: tpu7x:2x2x1
jax: 0.10.0
libtpu: 0.0.40
codegen_flags: <defaults>
</compile_context>

<pallas_src>
import functools

import jax
import jax.numpy as jnp
import numpy as np
from jax import lax
from jax.experimental import pallas as pl
from jax.experimental.pallas import tpu as pltpu


# ----------------------------------------------------------------------------
# Helpers
# ----------------------------------------------------------------------------
def _pick_tile(dim, target):
    """Largest tile <= target that divides `dim` exactly (no ragged blocks).

    Falls back to the full dim (always a legal block) when nothing divides;
    callers should keep seq/hidden multiples of the usual tile sizes so this
    fallback never blows the VMEM budget at production shapes.
    """
    if dim <= target:
        return dim
    for t in (target, target // 2, 256, 128, 64, 32, 16, 8):
        if 0 < t <= dim and dim % t == 0:
            return t
    return dim


@functools.lru_cache(maxsize=None)
def _vmem_limit_bytes(default=48 * 1024 * 1024):
    # Explicit scoped-VMEM budget (v7x only has 64 MiB physical VMEM); fall
    # back to the compiler default if the hardware query is unavailable.
    try:
        cap = int(pltpu.get_tpu_info().vmem_capacity_bytes)
        return int(min(default, cap * 3 // 4))
    except Exception:
        return None


# ----------------------------------------------------------------------------
# Pallas kernel 1: tiled matmul for the fused qkv projection and o_proj.
# ----------------------------------------------------------------------------
def _matmul_kernel_acc(x_ref, w_ref, o_ref, acc_ref):
    @pl.when(pl.program_id(2) == 0)
    def _():
        acc_ref[...] = jnp.zeros_like(acc_ref)

    acc_ref[...] += jnp.dot(x_ref[...], w_ref[...],
                            preferred_element_type=jnp.float32)

    @pl.when(pl.program_id(2) == pl.num_programs(2) - 1)
    def _():
        o_ref[...] = acc_ref[...].astype(o_ref.dtype)


def _matmul_kernel_f32out(x_ref, w_ref, o_ref):
    # f32 output: accumulate directly into the (persistent) output block, no
    # scratch buffer and no final tile copy.
    @pl.when(pl.program_id(2) == 0)
    def _():
        o_ref[...] = jnp.zeros_like(o_ref)

    o_ref[...] += jnp.dot(x_ref[...], w_ref[...],
                          preferred_element_type=jnp.float32)


def pallas_matmul(x, w, *, out_dtype=jnp.float32, tm=512, tn=512, tk=512):
    """x: (M, K) @ w: (K, N) -> (M, N). Operands should be bf16 (f32 accum)."""
    M, K = x.shape
    K2, N = w.shape
    assert K == K2
    tm = _pick_tile(M, tm)
    tn = _pick_tile(N, tn)
    tk = _pick_tile(K, tk)

    if np.dtype(out_dtype) == np.dtype(np.float32):
        kernel = _matmul_kernel_f32out
        scratch = ()
    else:
        kernel = _matmul_kernel_acc
        scratch = (pltpu.VMEM((tm, tn), jnp.float32),)

    return pl.pallas_call(
        kernel,
        out_shape=jax.ShapeDtypeStruct((M, N), out_dtype),
        grid=(M // tm, N // tn, K // tk),
        in_specs=[
            pl.BlockSpec((tm, tk), lambda i, j, k: (i, k)),
            pl.BlockSpec((tk, tn), lambda i, j, k: (k, j)),
        ],
        out_specs=pl.BlockSpec((tm, tn), lambda i, j, k: (i, j)),
        scratch_shapes=scratch,
        compiler_params=pltpu.CompilerParams(
            dimension_semantics=("parallel", "parallel", "arbitrary"),
            vmem_limit_bytes=_vmem_limit_bytes(),
        ),
    )(x, w)


# ----------------------------------------------------------------------------
# Pallas kernel 2: fused RoPE + complex causal linear attention + GroupNorm.
# One grid step handles one (batch, q-chunk, kv-chunk) triple for ALL heads;
# the (q-chunk, kv-chunk) pairs come from a lower-triangular SMEM schedule.
# ----------------------------------------------------------------------------
def _attn_gn_kernel(qb_tab, kb_tab,
                    q_ref, k_ref, v_ref,
                    cosq_ref, sinq_ref, cosk_ref, sink_ref,
                    gamma_ref, beta_ref,
                    o_ref, acc_ref, *,
                    num_heads, num_kv_heads, head_dim, eps):
    s = pl.program_id(1)
    qb = qb_tab[s]                  # query block index (from SMEM table)
    kb = kb_tab[s]                  # key/value block index (kb <= qb always)
    groups = num_heads // num_kv_heads
    d = head_dim // 2
    T = q_ref.shape[1]              # seq tile (same for q and kv blocks)
    cdt = q_ref.dtype               # compute dtype for MXU operands (bf16)

    # sign vector: -1 on the first half of each head, +1 on the second half.
    lane = lax.broadcasted_iota(jnp.int32, (1, head_dim), 1)
    neg_first = jnp.where(lane < d, -1.0, 1.0).astype(jnp.float32)
    conj = -neg_first               # +1 first half, -1 second half
    sign_c = neg_first.astype(cdt)

    def swap_halves(x):
        # [a | b] -> [b | a].  When the head is a full 128-lane multiple this
        # is a single XLU lane rotate (frees VPU / ld-st slots under the MXU).
        if head_dim % 128 == 0:
            return pltpu.roll(x, shift=d, axis=x.ndim - 1)
        return jnp.concatenate([x[..., d:], x[..., :d]], axis=-1)

    def rope(x, c2, s2, dagger):
        # x: (T, hd) raw projection = [xr | xi]; c2/s2: (T, hd) f32 = [c|c]/[s|s]
        # returns [real | imag] (conjugated for dagger), cast to MXU dtype.
        xf = x.astype(jnp.float32)
        y = xf * c2 + (swap_halves(xf) * neg_first) * s2
        if dagger:
            y = y * conj
        return y.astype(cdt)

    cq = cosq_ref[0]
    sq = sinq_ref[0]
    ck = cosk_ref[0]
    sk = sink_ref[0]

    @pl.when(kb == 0)
    def _init():
        acc_ref[...] = jnp.zeros_like(acc_ref)

    dn = (((1,), (1,)), ((), ()))   # contract last dims

    def process(masked):
        if masked:
            row = lax.broadcasted_iota(jnp.int32, (T, 2 * T), 0)
            col = lax.broadcasted_iota(jnp.int32, (T, 2 * T), 1)
            colm = jnp.where(col < T, col, col - T)    # mask replicated sr|si
            keep2 = colm <= row
        # TODO(synk): for very large num_heads on v7x, convert these static
        # Python loops to lax.fori_loop + pl.ds lane slices to bound live
        # ranges of the (T, 2T) f32 temporaries.
        for g in range(num_kv_heads):
            lo, hi = g * head_dim, (g + 1) * head_dim
            k_h = rope(k_ref[0, :, lo:hi], ck, sk, dagger=False)   # [ki | kr]
            v_h = v_ref[0, :, lo:hi]                               # [vi | vr]
            # Merged RHS operands (hoisted once per kv group):
            #   rows 0..T-1  -> sr path ([-ki | kr]), rows T..2T-1 -> si path ([kr | ki])
            kk = jnp.concatenate([k_h * sign_c, swap_halves(k_h)], axis=0)  # (2T, hd)
            vv = jnp.concatenate([swap_halves(v_h), v_h * sign_c], axis=0)  # (2T, hd)
            for hh in range(groups):          # GQA: static head -> kv head map
                h = g * groups + hh
                qlo, qhi = h * head_dim, (h + 1) * head_dim
                q_h = rope(q_ref[0, :, qlo:qhi], cq, sq, dagger=True)  # [qi | qr]
                # ONE score matmul: columns [0,T) = sr, [T,2T) = si.
                s_both = lax.dot_general(q_h, kk, dn,
                                         preferred_element_type=jnp.float32)
                if masked:
                    s_both = jnp.where(keep2, s_both, 0.0)
                # ONE S.V matmul with contraction 2T:
                #   [o_r | o_i] = sr @ [vr|vi] + si @ [-vi|vr]
                contrib = jnp.dot(s_both.astype(cdt), vv,
                                  preferred_element_type=jnp.float32)
                acc_ref[:, qlo:qhi] += contrib

    @pl.when(kb < qb)            # strictly-past chunk: no mask work at all
    def _past():
        process(masked=False)

    @pl.when(kb == qb)           # diagonal chunk: mask, then finalize this q block
    def _diag_and_finalize():
        process(masked=True)
        # Fused GroupNorm(num_groups=num_heads): each head is exactly one group.
        x = acc_ref[...]                          # (T, hidden) f32
        parts = []
        for h in range(num_heads):
            lo, hi = h * head_dim, (h + 1) * head_dim
            xh = x[:, lo:hi]
            mean = jnp.mean(xh, axis=-1, keepdims=True)
            var = jnp.mean(jnp.square(xh - mean), axis=-1, keepdims=True)
            parts.append((xh - mean) * lax.rsqrt(var + eps))
        xhat = jnp.concatenate(parts, axis=-1)    # (T, hidden)
        # single lane-dense full-width store
        o_ref[0, :, :] = (xhat * gamma_ref[...] + beta_ref[...]).astype(o_ref.dtype)


def complex_linear_attention_groupnorm(qkv, cos2, sin2, gamma, beta, *,
                                       num_heads, num_kv_heads, head_dim,
                                       eps=1e-5, seq_block=256):
    """qkv: (B, L, H*hd + 2*kvH*hd) fused projection output (bf16).
    cos2/sin2: (B, L, hd) f32 RoPE tables already gathered by position_ids
    and duplicated across the two halves.  gamma/beta: (H*hd,).

    Returns the GroupNorm-ed attention output, lane-dense as (B, L, H*hd).
    """
    B, L, total = qkv.shape
    hidden = num_heads * head_dim
    kv_hidden = num_kv_heads * head_dim
    groups = num_heads // num_kv_heads
    assert total == hidden + 2 * kv_hidden

    # Keep seq_block <= 256 when hidden is large on v7x (64 MiB VMEM); v5e/v6e
    # (128 MiB) can afford 512.
    T = _pick_tile(L, seq_block)
    nb = L // T

    # Lower-triangular (qb, kb) schedule -> no dead "future" grid steps.
    qb_l, kb_l = [], []
    for i in range(nb):
        for j in range(i + 1):
            qb_l.append(i)
            kb_l.append(j)
    qb_tab = jnp.asarray(qb_l, dtype=jnp.int32)
    kb_tab = jnp.asarray(kb_l, dtype=jnp.int32)
    n_steps = len(qb_l)

    gamma2 = jnp.asarray(gamma, jnp.float32).reshape(1, hidden)
    beta2 = jnp.asarray(beta, jnp.float32).reshape(1, hidden)

    # When the q/k/v column widths are 128-lane aligned, read q/k/v straight
    # out of the fused qkv array via column-block offsets (no slice copies in
    # HBM).  Otherwise (tiny test shapes) fall back to materialized slices.
    aligned = (hidden % 128 == 0) and (kv_hidden % 128 == 0)
    if aligned:
        q_arr = k_arr = v_arr = qkv
        q_cb, k_cb, v_cb = 0, groups, groups + 1
    else:
        q_arr = qkv[..., :hidden]
        k_arr = qkv[..., hidden:hidden + kv_hidden]
        v_arr = qkv[..., hidden + kv_hidden:]
        q_cb = k_cb = v_cb = 0

    def q_map(b, s, qt, kt, cb=q_cb):
        return (b, qt[s], cb)

    def k_map(b, s, qt, kt, cb=k_cb):
        return (b, kt[s], cb)

    def v_map(b, s, qt, kt, cb=v_cb):
        return (b, kt[s], cb)

    def rq_map(b, s, qt, kt):
        return (b, qt[s], 0)

    def rk_map(b, s, qt, kt):
        return (b, kt[s], 0)

    def gb_map(b, s, qt, kt):
        return (0, 0)

    def o_map(b, s, qt, kt):
        return (b, qt[s], 0)

    kern = functools.partial(_attn_gn_kernel, num_heads=num_heads,
                             num_kv_heads=num_kv_heads, head_dim=head_dim,
                             eps=eps)

    grid_spec = pltpu.PrefetchScalarGridSpec(
        num_scalar_prefetch=2,
        grid=(B, n_steps),
        in_specs=[
            pl.BlockSpec((1, T, hidden), q_map),
            pl.BlockSpec((1, T, kv_hidden), k_map),
            pl.BlockSpec((1, T, kv_hidden), v_map),
            pl.BlockSpec((1, T, head_dim), rq_map),   # cos for q block
            pl.BlockSpec((1, T, head_dim), rq_map),   # sin for q block
            pl.BlockSpec((1, T, head_dim), rk_map),   # cos for kv block
            pl.BlockSpec((1, T, head_dim), rk_map),   # sin for kv block
            pl.BlockSpec((1, hidden), gb_map),
            pl.BlockSpec((1, hidden), gb_map),
        ],
        out_specs=pl.BlockSpec((1, T, hidden), o_map),
        scratch_shapes=[pltpu.VMEM((T, hidden), jnp.float32)],
    )

    # TODO(synk): on v7x with B == 1 the only "parallel" axis is the batch, so
    # one TensorCore idles; split the q-block runs across a parallel axis if
    # that shape matters.
    return pl.pallas_call(
        kern,
        out_shape=jax.ShapeDtypeStruct((B, L, hidden), jnp.bfloat16),
        grid_spec=grid_spec,
        compiler_params=pltpu.CompilerParams(
            dimension_semantics=("parallel", "arbitrary"),
            vmem_limit_bytes=_vmem_limit_bytes(),
        ),
    )(qb_tab, kb_tab, q_arr, k_arr, v_arr, cos2, sin2, cos2, sin2,
      gamma2, beta2)


# ----------------------------------------------------------------------------
# JAX glue: RoPE tables (LlamaRotaryEmbedding, no scaling) and module forward.
# ----------------------------------------------------------------------------
def rope_cos_sin(max_pos, dim, base):
    inv_freq = 1.0 / (base ** (jnp.arange(0, dim, 2, dtype=jnp.float32) / dim))
    t = jnp.arange(max_pos, dtype=jnp.float32)
    freqs = jnp.einsum("i,j->ij", t, inv_freq)    # (max_pos, dim//2)
    return jnp.cos(freqs), jnp.sin(freqs)


def apply_rotary(x, cos, sin, position_ids, dagger=False):
    # Reference-only helper. x: (B, L, heads, hd); cos/sin: (max_pos, hd//2).
    c = cos[position_ids][:, :, None, :].astype(jnp.float32)
    s = sin[position_ids][:, :, None, :].astype(jnp.float32)
    half = x.shape[-1] // 2
    xr = x[..., :half].astype(jnp.float32)
    xi = x[..., half:].astype(jnp.float32)
    if dagger:
        xi = -xi
        s = -s
    return jnp.concatenate([xr * c - xi * s, xr * s + xi * c], axis=-1)


def fused_complex_linear_attention_forward(params, hidden_states, position_ids, cfg):
    B, L, hidden = hidden_states.shape
    H = cfg["num_heads"]
    kvH = cfg["num_kv_heads"]
    hd = hidden // H
    bf16 = jnp.bfloat16

    x2d = hidden_states.reshape(B * L, hidden).astype(bf16)

    # Fused q/k/v projection: read x from HBM once instead of 3x.
    w_qkv = jnp.concatenate(
        [params["wq"], params["wk"], params["wv"]], axis=1).astype(bf16)
    qkv = pallas_matmul(x2d, w_qkv, out_dtype=bf16)
    qkv = qkv.reshape(B, L, -1)

    # RoPE tables gathered by position_ids and duplicated across halves so the
    # in-kernel RoPE is a full-head-width elementwise op.
    cos, sin = rope_cos_sin(cfg["max_pos"], hd, cfg["rope_theta"])
    cos_g = cos[position_ids]                      # (B, L, hd//2) f32
    sin_g = sin[position_ids]
    cos2 = jnp.concatenate([cos_g, cos_g], axis=-1)  # (B, L, hd)
    sin2 = jnp.concatenate([sin_g, sin_g], axis=-1)

    attn = complex_linear_attention_groupnorm(
        qkv, cos2, sin2, params["gn_weight"], params["gn_bias"],
        num_heads=H, num_kv_heads=kvH, head_dim=hd,
        seq_block=cfg.get("seq_block", 256))         # (B, L, hidden), GN applied

    out = pallas_matmul(attn.reshape(B * L, hidden),
                        params["wo"].astype(bf16), out_dtype=jnp.float32)
    return out.reshape(B, L, hidden)


# ----------------------------------------------------------------------------
# Pure-JAX reference (same math, f32 HIGHEST, no Pallas) for verification.
# ----------------------------------------------------------------------------
def reference_forward(params, hidden_states, position_ids, cfg):
    P = lax.Precision.HIGHEST
    B, L, hidden = hidden_states.shape
    H = cfg["num_heads"]
    kvH = cfg["num_kv_heads"]
    hd = hidden // H
    groups = H // kvH

    x2d = hidden_states.reshape(B * L, hidden)
    q = jnp.dot(x2d, params["wq"], precision=P).reshape(B, L, H, hd)
    k = jnp.dot(x2d, params["wk"], precision=P).reshape(B, L, kvH, hd)
    v = jnp.dot(x2d, params["wv"], precision=P).reshape(B, L, kvH, hd)

    cos, sin = rope_cos_sin(cfg["max_pos"], hd, cfg["rope_theta"])
    q = apply_rotary(q, cos, sin, position_ids, dagger=True)
    k = apply_rotary(k, cos, sin, position_ids, dagger=False)

    q = q.transpose(0, 2, 1, 3)
    k = jnp.repeat(k.transpose(0, 2, 1, 3), groups, axis=1)
    v = jnp.repeat(v.transpose(0, 2, 1, 3), groups, axis=1)

    half = hd // 2
    qr, qi = q[..., half:], q[..., :half]
    kr, ki = k[..., half:], k[..., :half]
    vr, vi = v[..., half:], v[..., :half]

    ein = functools.partial(jnp.einsum, precision=P)
    sr = ein("bhmd,bhnd->bhmn", qr, kr) - ein("bhmd,bhnd->bhmn", qi, ki)
    si = ein("bhmd,bhnd->bhmn", qr, ki) + ein("bhmd,bhnd->bhmn", qi, kr)
    mask = jnp.tril(jnp.ones((L, L), dtype=bool))
    sr = jnp.where(mask, sr, 0.0)
    si = jnp.where(mask, si, 0.0)
    o_r = ein("bhmn,bhnd->bhmd", sr, vr) - ein("bhmn,bhnd->bhmd", si, vi)
    o_i = ein("bhmn,bhnd->bhmd", sr, vi) + ein("bhmn,bhnd->bhmd", si, vr)
    o = jnp.concatenate([o_r, o_i], axis=-1)        # (B, H, L, hd)

    o = o.transpose(0, 2, 1, 3).reshape(B * L, hidden)
    og = o.reshape(B * L, H, hd)
    mean = og.mean(axis=-1, keepdims=True)
    var = og.var(axis=-1, keepdims=True)            # biased, like nn.GroupNorm
    og = (og - mean) / jnp.sqrt(var + 1e-5)
    o = og.reshape(B * L, hidden) * params["gn_weight"] + params["gn_bias"]

    out = jnp.dot(o, params["wo"], precision=P).reshape(B, L, hidden)
    return out


# ----------------------------------------------------------------------------
def _run_test(cfg, B, L, seed=0):
    hidden = cfg["hidden_size"]
    H, kvH = cfg["num_heads"], cfg["num_kv_heads"]
    hd = hidden // H

    key = jax.random.PRNGKey(seed)
    ks = jax.random.split(key, 7)
    scale = 0.05
    params = {
        # weights stored as (in_features, out_features) == torch W^T
        "wq": jax.random.normal(ks[0], (hidden, H * hd), jnp.float32) * scale,
        "wk": jax.random.normal(ks[1], (hidden, kvH * hd), jnp.float32) * scale,
        "wv": jax.random.normal(ks[2], (hidden, kvH * hd), jnp.float32) * scale,
        "wo": jax.random.normal(ks[3], (hidden, hidden), jnp.float32) * scale,
        "gn_weight": 1.0 + 0.1 * jax.random.normal(ks[4], (hidden,), jnp.float32),
        "gn_bias": 0.1 * jax.random.normal(ks[5], (hidden,), jnp.float32),
    }
    hidden_states = jax.random.normal(ks[6], (B, L, hidden), jnp.float32)
    position_ids = jnp.broadcast_to(jnp.arange(L, dtype=jnp.int32), (B, L))

    fwd = jax.jit(
        lambda p, x, pos: fused_complex_linear_attention_forward(p, x, pos, cfg))
    out = jax.block_until_ready(fwd(params, hidden_states, position_ids))

    ref = reference_forward(params, hidden_states, position_ids, cfg)
    # bf16 MXU operands (f32 accumulation) vs an f32-HIGHEST reference.
    np.testing.assert_allclose(np.asarray(out, dtype=np.float32),
                               np.asarray(ref, dtype=np.float32),
                               rtol=4e-2, atol=4e-2)


if __name__ == "__main__":
    # Primary small test: single kv chunk (diagonal masked path).
    cfg = dict(
        hidden_size=32,
        num_heads=4,
        num_kv_heads=2,
        max_pos=32,
        rope_theta=10000.0,
    )
    _run_test(cfg, B=2, L=8, seed=0)

    # Second test: forces multiple seq chunks (seq_block=8, L=16) so the
    # triangular schedule (past chunk / diagonal chunk), in-kernel RoPE across
    # blocks, and GQA head mapping are all exercised.
    cfg2 = dict(cfg, seq_block=8)
    _run_test(cfg2, B=2, L=16, seed=0)

    print("KERNEL_OK")
</pallas_src>

<mosaic_0001>
module attributes {stable_mosaic.version = 11 : i64} {
  func.func @_matmul_kernel_acc(%arg0: i32, %arg1: i32, %arg2: i32, %arg3: memref<16x32xbf16, #tpu.memory_space<vmem>>, %arg4: memref<32x64xbf16, #tpu.memory_space<vmem>>, %arg5: memref<16x64xbf16, #tpu.memory_space<vmem>>, %arg6: memref<16x64xf32, #tpu.memory_space<vmem>>) attributes {dimension_semantics = [#tpu.dimension_semantics<parallel>, #tpu.dimension_semantics<parallel>, #tpu.dimension_semantics<arbitrary>], iteration_bounds = array<i64: 1, 1, 1>, scalar_prefetch = 0 : i64, scratch_operands = 1 : i64, tpu.core_type = #tpu.core_type<tc>, window_params = [{transform_indices = @transform_0, window_bounds = array<i64: 16, 32>}, {transform_indices = @transform_1, window_bounds = array<i64: 32, 64>}, {transform_indices = @transform_2, window_bounds = array<i64: 16, 64>}]} {
    %c0_i32 = arith.constant 0 : i32
    %0 = arith.cmpi eq, %arg2, %c0_i32 : i32
    %1 = arith.extui %0 : i1 to i32
    %c0_i32_0 = arith.constant 0 : i32
    %2 = arith.cmpi ne, %1, %c0_i32_0 : i32
    scf.if %2 {
      %cst_10 = arith.constant 0.000000e+00 : f32
      %12 = vector.broadcast %cst_10 : f32 to vector<16x64xf32>
      %c0_11 = arith.constant 0 : index
      %c0_12 = arith.constant 0 : index
      %13 = vector.load %arg6[%c0_11, %c0_12] : memref<16x64xf32, #tpu.memory_space<vmem>>, vector<16x64xf32>
      tpu.vector_store %arg6[%c0_11, %c0_12], %12 {strides = array<i32>} : memref<16x64xf32, #tpu.memory_space<vmem>>, vector<16x64xf32>,
    } else {
    }
    %c0 = arith.constant 0 : index
    %c0_1 = arith.constant 0 : index
    %3 = vector.load %arg6[%c0, %c0_1] : memref<16x64xf32, #tpu.memory_space<vmem>>, vector<16x64xf32>
    %c0_2 = arith.constant 0 : index
    %c0_3 = arith.constant 0 : index
    %4 = vector.load %arg3[%c0_2, %c0_3] : memref<16x32xbf16, #tpu.memory_space<vmem>>, vector<16x32xbf16>
    %c0_4 = arith.constant 0 : index
    %c0_5 = arith.constant 0 : index
    %5 = vector.load %arg4[%c0_4, %c0_5] : memref<32x64xbf16, #tpu.memory_space<vmem>>, vector<32x64xbf16>
    %cst = arith.constant dense<0.000000e+00> : vector<16x64xf32>
    %6 = tpu.matmul %4, %5, %cst {dimension_numbers = #tpu.dot_dimension_numbers<[1], [0], [0], [1], [0, 0, 1, 1], [], []>} : vector<16x32xbf16>, vector<32x64xbf16>, vector<16x64xf32> -> vector<16x64xf32>
    %7 = arith.addf %3, %6 : vector<16x64xf32>
    %c0_6 = arith.constant 0 : index
    %c0_7 = arith.constant 0 : index
    %8 = vector.load %arg6[%c0_6, %c0_7] : memref<16x64xf32, #tpu.memory_space<vmem>>, vector<16x64xf32>
    tpu.vector_store %arg6[%c0_6, %c0_7], %7 {strides = array<i32>} : memref<16x64xf32, #tpu.memory_space<vmem>>, vector<16x64xf32>,
    %c0_i32_8 = arith.constant 0 : i32
    %9 = arith.cmpi eq, %arg2, %c0_i32_8 : i32
    %10 = arith.extui %9 : i1 to i32
    %c0_i32_9 = arith.constant 0 : i32
    %11 = arith.cmpi ne, %10, %c0_i32_9 : i32
    scf.if %11 {
      %c0_10 = arith.constant 0 : index
      %c0_11 = arith.constant 0 : index
      %12 = vector.load %arg6[%c0_10, %c0_11] : memref<16x64xf32, #tpu.memory_space<vmem>>, vector<16x64xf32>
      %13 = arith.truncf %12 : vector<16x64xf32> to vector<16x64xbf16>
      %c0_12 = arith.constant 0 : index
      %c0_13 = arith.constant 0 : index
      %14 = vector.load %arg5[%c0_12, %c0_13] : memref<16x64xbf16, #tpu.memory_space<vmem>>, vector<16x64xbf16>
      tpu.vector_store %arg5[%c0_12, %c0_13], %13 {strides = array<i32>} : memref<16x64xbf16, #tpu.memory_space<vmem>>, vector<16x64xbf16>,
    } else {
    }
    return
  }
  func.func @transform_0(%arg0: i32, %arg1: i32, %arg2: i32) -> (i32, i32) {
    %c0_i32 = arith.constant 0 : i32
    return %arg0, %arg2 : i32, i32
  }
  func.func @transform_1(%arg0: i32, %arg1: i32, %arg2: i32) -> (i32, i32) {
    %c0_i32 = arith.constant 0 : i32
    return %arg2, %arg1 : i32, i32
  }
  func.func @transform_2(%arg0: i32, %arg1: i32, %arg2: i32) -> (i32, i32) {
    %c0_i32 = arith.constant 0 : i32
    return %arg0, %arg1 : i32, i32
  }
}

module attributes {stable_mosaic.version = 11 : i64} {
  func.func @_matmul_kernel_f32out(%arg0: i32, %arg1: i32, %arg2: i32, %arg3: memref<16x32xbf16, #tpu.memory_space<vmem>>, %arg4: memref<32x32xbf16, #tpu.memory_space<vmem>>, %arg5: memref<16x32xf32, #tpu.memory_space<vmem>>) attributes {dimension_semantics = [#tpu.dimension_semantics<parallel>, #tpu.dimension_semantics<parallel>, #tpu.dimension_semantics<arbitrary>], iteration_bounds = array<i64: 1, 1, 1>, scalar_prefetch = 0 : i64, scratch_operands = 0 : i64, tpu.core_type = #tpu.core_type<tc>, window_params = [{transform_indices = @transform_0, window_bounds = array<i64: 16, 32>}, {transform_indices = @transform_1, window_bounds = array<i64: 32, 32>}, {transform_indices = @transform_2, window_bounds = array<i64: 16, 32>}]} {
    %c0_i32 = arith.constant 0 : i32
    %0 = arith.cmpi eq, %arg2, %c0_i32 : i32
    %1 = arith.extui %0 : i1 to i32
    %c0_i32_0 = arith.constant 0 : i32
    %2 = arith.cmpi ne, %1, %c0_i32_0 : i32
    scf.if %2 {
      %cst_8 = arith.constant 0.000000e+00 : f32
      %9 = vector.broadcast %cst_8 : f32 to vector<16x32xf32>
      %c0_9 = arith.constant 0 : index
      %c0_10 = arith.constant 0 : index
      %10 = vector.load %arg5[%c0_9, %c0_10] : memref<16x32xf32, #tpu.memory_space<vmem>>, vector<16x32xf32>
      tpu.vector_store %arg5[%c0_9, %c0_10], %9 {strides = array<i32>} : memref<16x32xf32, #tpu.memory_space<vmem>>, vector<16x32xf32>,
    } else {
    }
    %c0 = arith.constant 0 : index
    %c0_1 = arith.constant 0 : index
    %3 = vector.load %arg5[%c0, %c0_1] : memref<16x32xf32, #tpu.memory_space<vmem>>, vector<16x32xf32>
    %c0_2 = arith.constant 0 : index
    %c0_3 = arith.constant 0 : index
    %4 = vector.load %arg3[%c0_2, %c0_3] : memref<16x32xbf16, #tpu.memory_space<vmem>>, vector<16x32xbf16>
    %c0_4 = arith.constant 0 : index
    %c0_5 = arith.constant 0 : index
    %5 = vector.load %arg4[%c0_4, %c0_5] : memref<32x32xbf16, #tpu.memory_space<vmem>>, vector<32x32xbf16>
    %cst = arith.constant dense<0.000000e+00> : vector<16x32xf32>
    %6 = tpu.matmul %4, %5, %cst {dimension_numbers = #tpu.dot_dimension_numbers<[1], [0], [0], [1], [0, 0, 1, 1], [], []>} : vector<16x32xbf16>, vector<32x32xbf16>, vector<16x32xf32> -> vector<16x32xf32>
    %7 = arith.addf %3, %6 : vector<16x32xf32>
    %c0_6 = arith.constant 0 : index
    %c0_7 = arith.constant 0 : index
    %8 = vector.load %arg5[%c0_6, %c0_7] : memref<16x32xf32, #tpu.memory_space<vmem>>, vector<16x32xf32>
    tpu.vector_store %arg5[%c0_6, %c0_7], %7 {strides = array<i32>} : memref<16x32xf32, #tpu.memory_space<vmem>>, vector<16x32xf32>,
    return
  }
  func.func @transform_0(%arg0: i32, %arg1: i32, %arg2: i32) -> (i32, i32) {
    %c0_i32 = arith.constant 0 : i32
    return %arg0, %arg2 : i32, i32
  }
  func.func @transform_1(%arg0: i32, %arg1: i32, %arg2: i32) -> (i32, i32) {
    %c0_i32 = arith.constant 0 : i32
    return %arg2, %arg1 : i32, i32
  }
  func.func @transform_2(%arg0: i32, %arg1: i32, %arg2: i32) -> (i32, i32) {
    %c0_i32 = arith.constant 0 : i32
    return %arg0, %arg1 : i32, i32
  }
}

module attributes {stable_mosaic.version = 11 : i64} {
  func.func @_attn_gn_kernel(%arg0: i32, %arg1: i32, %arg2: memref<1xi32, #tpu.memory_space<smem>>, %arg3: memref<1xi32, #tpu.memory_space<smem>>, %arg4: memref<1x8x32xbf16, #tpu.memory_space<vmem>>, %arg5: memref<1x8x16xbf16, #tpu.memory_space<vmem>>, %arg6: memref<1x8x16xbf16, #tpu.memory_space<vmem>>, %arg7: memref<1x8x8xf32, #tpu.memory_space<vmem>>, %arg8: memref<1x8x8xf32, #tpu.memory_space<vmem>>, %arg9: memref<1x8x8xf32, #tpu.memory_space<vmem>>, %arg10: memref<1x8x8xf32, #tpu.memory_space<vmem>>, %arg11: memref<1x32xf32, #tpu.memory_space<vmem>>, %arg12: memref<1x32xf32, #tpu.memory_space<vmem>>, %arg13: memref<1x8x32xbf16, #tpu.memory_space<vmem>>, %arg14: memref<8x32xf32, #tpu.memory_space<vmem>>) attributes {dimension_semantics = [#tpu.dimension_semantics<parallel>, #tpu.dimension_semantics<arbitrary>], iteration_bounds = array<i64: 2, 1>, scalar_prefetch = 2 : i64, scratch_operands = 1 : i64, tpu.core_type = #tpu.core_type<tc>, window_params = [{transform_indices = @transform_0, window_bounds = array<i64: 1, 8, 32>}, {transform_indices = @transform_1, window_bounds = array<i64: 1, 8, 16>}, {transform_indices = @transform_2, window_bounds = array<i64: 1, 8, 16>}, {transform_indices = @transform_3, window_bounds = array<i64: 1, 8, 8>}, {transform_indices = @transform_4, window_bounds = array<i64: 1, 8, 8>}, {transform_indices = @transform_5, window_bounds = array<i64: 1, 8, 8>}, {transform_indices = @transform_6, window_bounds = array<i64: 1, 8, 8>}, {pipeline_mode = #tpu.pipeline_mode<synchronous>, transform_indices = @transform_7, window_bounds = array<i64: 1, 32>}, {pipeline_mode = #tpu.pipeline_mode<synchronous>, transform_indices = @transform_8, window_bounds = array<i64: 1, 32>}, {transform_indices = @transform_9, window_bounds = array<i64: 1, 8, 32>}]} {
    %0 = arith.index_cast %arg1 : i32 to index
    %1 = memref.load %arg2[%0] : memref<1xi32, #tpu.memory_space<smem>>
    %2 = arith.index_cast %arg1 : i32 to index
    %3 = memref.load %arg3[%2] : memref<1xi32, #tpu.memory_space<smem>>
    %4 = tpu.iota {dimensions = array<i32: 1>} : vector<1x8xi32>
    %c4_i32 = arith.constant 4 : i32
    %5 = vector.broadcast %c4_i32 : i32 to vector<1x8xi32>
    %6 = arith.cmpi slt, %4, %5 : vector<1x8xi32>
    %cst = arith.constant -1.000000e+00 : f32
    %cst_0 = arith.constant 1.000000e+00 : f32
    %7 = vector.broadcast %cst : f32 to vector<1x8xf32>
    %8 = vector.broadcast %cst_0 : f32 to vector<1x8xf32>
    %9 = arith.select %6, %7, %8 : vector<1x8xi1>, vector<1x8xf32>
    %cst_1 = arith.constant 0.000000e+00 : f32
    %10 = vector.broadcast %cst_1 : f32 to vector<1x8xf32>
    %11 = arith.subf %10, %9 : vector<1x8xf32>
    %12 = arith.truncf %9 : vector<1x8xf32> to vector<1x8xbf16>
    %c0 = arith.constant 0 : index
    %c0_2 = arith.constant 0 : index
    %c0_3 = arith.constant 0 : index
    %13 = vector.load %arg7[%c0, %c0_2, %c0_3] : memref<1x8x8xf32, #tpu.memory_space<vmem>>, vector<1x8x8xf32>
    %14 = vector.shape_cast %13 : vector<1x8x8xf32> to vector<8x8xf32>
    %c0_4 = arith.constant 0 : index
    %c0_5 = arith.constant 0 : index
    %c0_6 = arith.constant 0 : index
    %15 = vector.load %arg8[%c0_4, %c0_5, %c0_6] : memref<1x8x8xf32, #tpu.memory_space<vmem>>, vector<1x8x8xf32>
    %16 = vector.shape_cast %15 : vector<1x8x8xf32> to vector<8x8xf32>
    %c0_7 = arith.constant 0 : index
    %c0_8 = arith.constant 0 : index
    %c0_9 = arith.constant 0 : index
    %17 = vector.load %arg9[%c0_7, %c0_8, %c0_9] : memref<1x8x8xf32, #tpu.memory_space<vmem>>, vector<1x8x8xf32>
    %18 = vector.shape_cast %17 : vector<1x8x8xf32> to vector<8x8xf32>
    %c0_10 = arith.constant 0 : index
    %c0_11 = arith.constant 0 : index
    %c0_12 = arith.constant 0 : index
    %19 = vector.load %arg10[%c0_10, %c0_11, %c0_12] : memref<1x8x8xf32, #tpu.memory_space<vmem>>, vector<1x8x8xf32>
    %20 = vector.shape_cast %19 : vector<1x8x8xf32> to vector<8x8xf32>
    %c0_i32 = arith.constant 0 : i32
    %21 = arith.cmpi eq, %3, %c0_i32 : i32
    %22 = arith.extui %21 : i1 to i32
    %c0_i32_13 = arith.constant 0 : i32
    %23 = arith.cmpi ne, %22, %c0_i32_13 : i32
    scf.if %23 {
      %cst_16 = arith.constant 0.000000e+00 : f32
      %30 = vector.broadcast %cst_16 : f32 to vector<8x32xf32>
      %c0_17 = arith.constant 0 : index
      %c0_18 = arith.constant 0 : index
      %31 = vector.load %arg14[%c0_17, %c0_18] : memref<8x32xf32, #tpu.memory_space<vmem>>, vector<8x32xf32>
      tpu.vector_store %arg14[%c0_17, %c0_18], %30 {strides = array<i32>} : memref<8x32xf32, #tpu.memory_space<vmem>>, vector<8x32xf32>,
    } else {
    }
    %24 = arith.cmpi slt, %3, %1 : i32
    %25 = arith.extui %24 : i1 to i32
    %c0_i32_14 = arith.constant 0 : i32
    %26 = arith.cmpi ne, %25, %c0_i32_14 : i32
    scf.if %26 {
      %c0_16 = arith.constant 0 : index
      %c0_17 = arith.constant 0 : index
      %c0_18 = arith.constant 0 : index
      %30 = vector.load %arg5[%c0_16, %c0_17, %c0_18] : memref<1x8x16xbf16, #tpu.memory_space<vmem>>, vector<1x8x8xbf16>
      %31 = vector.shape_cast %30 : vector<1x8x8xbf16> to vector<8x8xbf16>
      %32 = arith.extf %31 : vector<8x8xbf16> to vector<8x8xf32>
      %33 = arith.mulf %32, %18 : vector<8x8xf32>
      %34 = vector.extract_strided_slice %32 {offsets = [0, 4], sizes = [8, 4], strides = [1, 1]} : vector<8x8xf32> to vector<8x4xf32>
      %35 = vector.extract_strided_slice %32 {offsets = [0, 0], sizes = [8, 4], strides = [1, 1]} : vector<8x8xf32> to vector<8x4xf32>
      %36 = tpu.concatenate %34, %35 in 1 : vector<8x4xf32>, vector<8x4xf32> -> vector<8x8xf32>
      %37 = vector.broadcast %9 : vector<1x8xf32> to vector<8x8xf32>
      %38 = arith.mulf %36, %37 : vector<8x8xf32>
      %39 = arith.mulf %38, %20 : vector<8x8xf32>
      %40 = arith.addf %33, %39 : vector<8x8xf32>
      %41 = arith.truncf %40 : vector<8x8xf32> to vector<8x8xbf16>
      %c0_19 = arith.constant 0 : index
      %c0_20 = arith.constant 0 : index
      %c0_21 = arith.constant 0 : index
      %42 = vector.load %arg6[%c0_19, %c0_20, %c0_21] : memref<1x8x16xbf16, #tpu.memory_space<vmem>>, vector<1x8x8xbf16>
      %43 = vector.shape_cast %42 : vector<1x8x8xbf16> to vector<8x8xbf16>
      %44 = vector.broadcast %12 : vector<1x8xbf16> to vector<8x8xbf16>
      %45 = arith.mulf %41, %44 : vector<8x8xbf16>
      %46 = vector.extract_strided_slice %41 {offsets = [0, 4], sizes = [8, 4], strides = [1, 1]} : vector<8x8xbf16> to vector<8x4xbf16>
      %47 = vector.extract_strided_slice %41 {offsets = [0, 0], sizes = [8, 4], strides = [1, 1]} : vector<8x8xbf16> to vector<8x4xbf16>
      %48 = tpu.concatenate %46, %47 in 1 : vector<8x4xbf16>, vector<8x4xbf16> -> vector<8x8xbf16>
      %49 = tpu.concatenate %45, %48 in 0 : vector<8x8xbf16>, vector<8x8xbf16> -> vector<16x8xbf16>
      %50 = vector.extract_strided_slice %43 {offsets = [0, 4], sizes = [8, 4], strides = [1, 1]} : vector<8x8xbf16> to vector<8x4xbf16>
      %51 = vector.extract_strided_slice %43 {offsets = [0, 0], sizes = [8, 4], strides = [1, 1]} : vector<8x8xbf16> to vector<8x4xbf16>
      %52 = tpu.concatenate %50, %51 in 1 : vector<8x4xbf16>, vector<8x4xbf16> -> vector<8x8xbf16>
      %53 = vector.broadcast %12 : vector<1x8xbf16> to vector<8x8xbf16>
      %54 = arith.mulf %43, %53 : vector<8x8xbf16>
      %55 = tpu.concatenate %52, %54 in 0 : vector<8x8xbf16>, vector<8x8xbf16> -> vector<16x8xbf16>
      %c0_22 = arith.constant 0 : index
      %c0_23 = arith.constant 0 : index
      %c0_24 = arith.constant 0 : index
      %56 = vector.load %arg4[%c0_22, %c0_23, %c0_24] : memref<1x8x32xbf16, #tpu.memory_space<vmem>>, vector<1x8x8xbf16>
      %57 = vector.shape_cast %56 : vector<1x8x8xbf16> to vector<8x8xbf16>
      %58 = arith.extf %57 : vector<8x8xbf16> to vector<8x8xf32>
      %59 = arith.mulf %58, %14 : vector<8x8xf32>
      %60 = vector.extract_strided_slice %58 {offsets = [0, 4], sizes = [8, 4], strides = [1, 1]} : vector<8x8xf32> to vector<8x4xf32>
      %61 = vector.extract_strided_slice %58 {offsets = [0, 0], sizes = [8, 4], strides = [1, 1]} : vector<8x8xf32> to vector<8x4xf32>
      %62 = tpu.concatenate %60, %61 in 1 : vector<8x4xf32>, vector<8x4xf32> -> vector<8x8xf32>
      %63 = vector.broadcast %9 : vector<1x8xf32> to vector<8x8xf32>
      %64 = arith.mulf %62, %63 : vector<8x8xf32>
      %65 = arith.mulf %64, %16 : vector<8x8xf32>
      %66 = arith.addf %59, %65 : vector<8x8xf32>
      %67 = vector.broadcast %11 : vector<1x8xf32> to vector<8x8xf32>
      %68 = arith.mulf %66, %67 : vector<8x8xf32>
      %69 = arith.truncf %68 : vector<8x8xf32> to vector<8x8xbf16>
      %cst_25 = arith.constant dense<0.000000e+00> : vector<8x16xf32>
      %70 = tpu.matmul %69, %49, %cst_25 {dimension_numbers = #tpu.dot_dimension_numbers<[1], [1], [0], [0], [0, 0, 1, 0], [], []>} : vector<8x8xbf16>, vector<16x8xbf16>, vector<8x16xf32> -> vector<8x16xf32>
      %71 = arith.truncf %70 : vector<8x16xf32> to vector<8x16xbf16>
      %cst_26 = arith.constant dense<0.000000e+00> : vector<8x8xf32>
      %72 = tpu.matmul %71, %55, %cst_26 {dimension_numbers = #tpu.dot_dimension_numbers<[1], [0], [0], [1], [0, 0, 1, 1], [], []>} : vector<8x16xbf16>, vector<16x8xbf16>, vector<8x8xf32> -> vector<8x8xf32>
      %c0_27 = arith.constant 0 : index
      %c0_28 = arith.constant 0 : index
      %73 = vector.load %arg14[%c0_27, %c0_28] : memref<8x32xf32, #tpu.memory_space<vmem>>, vector<8x8xf32>
      %74 = arith.addf %73, %72 : vector<8x8xf32>
      %c0_29 = arith.constant 0 : index
      %c0_30 = arith.constant 0 : index
      %75 = vector.load %arg14[%c0_29, %c0_30] : memref<8x32xf32, #tpu.memory_space<vmem>>, vector<8x8xf32>
      tpu.vector_store %arg14[%c0_29, %c0_30], %74 {strides = array<i32>} : memref<8x32xf32, #tpu.memory_space<vmem>>, vector<8x8xf32>,
      %c0_31 = arith.constant 0 : index
      %c0_32 = arith.constant 0 : index
      %c8 = arith.constant 8 : index
      %76 = vector.load %arg4[%c0_31, %c0_32, %c8] : memref<1x8x32xbf16, #tpu.memory_space<vmem>>, vector<1x8x8xbf16>
      %77 = vector.shape_cast %76 : vector<1x8x8xbf16> to vector<8x8xbf16>
      %78 = arith.extf %77 : vector<8x8xbf16> to vector<8x8xf32>
      %79 = arith.mulf %78, %14 : vector<8x8xf32>
      %80 = vector.extract_strided_slice %78 {offsets = [0, 4], sizes = [8, 4], strides = [1, 1]} : vector<8x8xf32> to vector<8x4xf32>
      %81 = vector.extract_strided_slice %78 {offsets = [0, 0], sizes = [8, 4], strides = [1, 1]} : vector<8x8xf32> to vector<8x4xf32>
      %82 = tpu.concatenate %80, %81 in 1 : vector<8x4xf32>, vector<8x4xf32> -> vector<8x8xf32>
      %83 = vector.broadcast %9 : vector<1x8xf32> to vector<8x8xf32>
      %84 = arith.mulf %82, %83 : vector<8x8xf32>
      %85 = arith.mulf %84, %16 : vector<8x8xf32>
      %86 = arith.addf %79, %85 : vector<8x8xf32>
      %87 = vector.broadcast %11 : vector<1x8xf32> to vector<8x8xf32>
      %88 = arith.mulf %86, %87 : vector<8x8xf32>
      %89 = arith.truncf %88 : vector<8x8xf32> to vector<8x8xbf16>
      %cst_33 = arith.constant dense<0.000000e+00> : vector<8x16xf32>
      %90 = tpu.matmul %89, %49, %cst_33 {dimension_numbers = #tpu.dot_dimension_numbers<[1], [1], [0], [0], [0, 0, 1, 0], [], []>} : vector<8x8xbf16>, vector<16x8xbf16>, vector<8x16xf32> -> vector<8x16xf32>
      %91 = arith.truncf %90 : vector<8x16xf32> to vector<8x16xbf16>
      %cst_34 = arith.constant dense<0.000000e+00> : vector<8x8xf32>
      %92 = tpu.matmul %91, %55, %cst_34 {dimension_numbers = #tpu.dot_dimension_numbers<[1], [0], [0], [1], [0, 0, 1, 1], [], []>} : vector<8x16xbf16>, vector<16x8xbf16>, vector<8x8xf32> -> vector<8x8xf32>
      %c0_35 = arith.constant 0 : index
      %c8_36 = arith.constant 8 : index
      %93 = vector.load %arg14[%c0_35, %c8_36] : memref<8x32xf32, #tpu.memory_space<vmem>>, vector<8x8xf32>
      %94 = arith.addf %93, %92 : vector<8x8xf32>
      %c0_37 = arith.constant 0 : index
      %c8_38 = arith.constant 8 : index
      %95 = vector.load %arg14[%c0_37, %c8_38] : memref<8x32xf32, #tpu.memory_space<vmem>>, vector<8x8xf32>
      tpu.vector_store %arg14[%c0_37, %c8_38], %94 {strides = array<i32>} : memref<8x32xf32, #tpu.memory_space<vmem>>, vector<8x8xf32>,
      %c0_39 = arith.constant 0 : index
      %c0_40 = arith.constant 0 : index
      %c8_41 = arith.constant 8 : index
      %96 = vector.load %arg5[%c0_39, %c0_40, %c8_41] : memref<1x8x16xbf16, #tpu.memory_space<vmem>>, vector<1x8x8xbf16>
      %97 = vector.shape_cast %96 : vector<1x8x8xbf16> to vector<8x8xbf16>
      %98 = arith.extf %97 : vector<8x8xbf16> to vector<8x8xf32>
      %99 = arith.mulf %98, %18 : vector<8x8xf32>
      %100 = vector.extract_strided_slice %98 {offsets = [0, 4], sizes = [8, 4], strides = [1, 1]} : vector<8x8xf32> to vector<8x4xf32>
      %101 = vector.extract_strided_slice %98 {offsets = [0, 0], sizes = [8, 4], strides = [1, 1]} : vector<8x8xf32> to vector<8x4xf32>
      %102 = tpu.concatenate %100, %101 in 1 : vector<8x4xf32>, vector<8x4xf32> -> vector<8x8xf32>
      %103 = vector.broadcast %9 : vector<1x8xf32> to vector<8x8xf32>
      %104 = arith.mulf %102, %103 : vector<8x8xf32>
      %105 = arith.mulf %104, %20 : vector<8x8xf32>
      %106 = arith.addf %99, %105 : vector<8x8xf32>
      %107 = arith.truncf %106 : vector<8x8xf32> to vector<8x8xbf16>
      %c0_42 = arith.constant 0 : index
      %c0_43 = arith.constant 0 : index
      %c8_44 = arith.constant 8 : index
      %108 = vector.load %arg6[%c0_42, %c0_43, %c8_44] : memref<1x8x16xbf16, #tpu.memory_space<vmem>>, vector<1x8x8xbf16>
      %109 = vector.shape_cast %108 : vector<1x8x8xbf16> to vector<8x8xbf16>
      %110 = vector.broadcast %12 : vector<1x8xbf16> to vector<8x8xbf16>
      %111 = arith.mulf %107, %110 : vector<8x8xbf16>
      %112 = vector.extract_strided_slice %107 {offsets = [0, 4], sizes = [8, 4], strides = [1, 1]} : vector<8x8xbf16> to vector<8x4xbf16>
      %113 = vector.extract_strided_slice %107 {offsets = [0, 0], sizes = [8, 4], strides = [1, 1]} : vector<8x8xbf16> to vector<8x4xbf16>
      %114 = tpu.concatenate %112, %113 in 1 : vector<8x4xbf16>, vector<8x4xbf16> -> vector<8x8xbf16>
      %115 = tpu.concatenate %111, %114 in 0 : vector<8x8xbf16>, vector<8x8xbf16> -> vector<16x8xbf16>
      %116 = vector.extract_strided_slice %109 {offsets = [0, 4], sizes = [8, 4], strides = [1, 1]} : vector<8x8xbf16> to vector<8x4xbf16>
      %117 = vector.extract_strided_slice %109 {offsets = [0, 0], sizes = [8, 4], strides = [1, 1]} : vector<8x8xbf16> to vector<8x4xbf16>
      %118 = tpu.concatenate %116, %117 in 1 : vector<8x4xbf16>, vector<8x4xbf16> -> vector<8x8xbf16>
      %119 = vector.broadcast %12 : vector<1x8xbf16> to vector<8x8xbf16>
      %120 = arith.mulf %109, %119 : vector<8x8xbf16>
      %121 = tpu.concatenate %118, %120 in 0 : vector<8x8xbf16>, vector<8x8xbf16> -> vector<16x8xbf16>
      %c0_45 = arith.constant 0 : index
      %c0_46 = arith.constant 0 : index
      %c16 = arith.constant 16 : index
      %122 = vector.load %arg4[%c0_45, %c0_46, %c16] : memref<1x8x32xbf16, #tpu.memory_space<vmem>>, vector<1x8x8xbf16>
      %123 = vector.shape_cast %122 : vector<1x8x8xbf16> to vector<8x8xbf16>
      %124 = arith.extf %123 : vector<8x8xbf16> to vector<8x8xf32>
      %125 = arith.mulf %124, %14 : vector<8x8xf32>
      %126 = vector.extract_strided_slice %124 {offsets = [0, 4], sizes = [8, 4], strides = [1, 1]} : vector<8x8xf32> to vector<8x4xf32>
      %127 = vector.extract_strided_slice %124 {offsets = [0, 0], sizes = [8, 4], strides = [1, 1]} : vector<8x8xf32> to vector<8x4xf32>
      %128 = tpu.concatenate %126, %127 in 1 : vector<8x4xf32>, vector<8x4xf32> -> vector<8x8xf32>
      %129 = vector.broadcast %9 : vector<1x8xf32> to vector<8x8xf32>
      %130 = arith.mulf %128, %129 : vector<8x8xf32>
      %131 = arith.mulf %130, %16 : vector<8x8xf32>
      %132 = arith.addf %125, %131 : vector<8x8xf32>
      %133 = vector.broadcast %11 : vector<1x8xf32> to vector<8x8xf32>
      %134 = arith.mulf %132, %133 : vector<8x8xf32>
      %135 = arith.truncf %134 : vector<8x8xf32> to vector<8x8xbf16>
      %cst_47 = arith.constant dense<0.000000e+00> : vector<8x16xf32>
      %136 = tpu.matmul %135, %115, %cst_47 {dimension_numbers = #tpu.dot_dimension_numbers<[1], [1], [0], [0], [0, 0, 1, 0], [], []>} : vector<8x8xbf16>, vector<16x8xbf16>, vector<8x16xf32> -> vector<8x16xf32>
      %137 = arith.truncf %136 : vector<8x16xf32> to vector<8x16xbf16>
      %cst_48 = arith.constant dense<0.000000e+00> : vector<8x8xf32>
      %138 = tpu.matmul %137, %121, %cst_48 {dimension_numbers = #tpu.dot_dimension_numbers<[1], [0], [0], [1], [0, 0, 1, 1], [], []>} : vector<8x16xbf16>, vector<16x8xbf16>, vector<8x8xf32> -> vector<8x8xf32>
      %c0_49 = arith.constant 0 : index
      %c16_50 = arith.constant 16 : index
      %139 = vector.load %arg14[%c0_49, %c16_50] : memref<8x32xf32, #tpu.memory_space<vmem>>, vector<8x8xf32>
      %140 = arith.addf %139, %138 : vector<8x8xf32>
      %c0_51 = arith.constant 0 : index
      %c16_52 = arith.constant 16 : index
      %141 = vector.load %arg14[%c0_51, %c16_52] : memref<8x32xf32, #tpu.memory_space<vmem>>, vector<8x8xf32>
      tpu.vector_store %arg14[%c0_51, %c16_52], %140 {strides = array<i32>} : memref<8x32xf32, #tpu.memory_space<vmem>>, vector<8x8xf32>,
      %c0_53 = arith.constant 0 : index
      %c0_54 = arith.constant 0 : index
      %c24 = arith.constant 24 : index
      %142 = vector.load %arg4[%c0_53, %c0_54, %c24] : memref<1x8x32xbf16, #tpu.memory_space<vmem>>, vector<1x8x8xbf16>
      %143 = vector.shape_cast %142 : vector<1x8x8xbf16> to vector<8x8xbf16>
      %144 = arith.extf %143 : vector<8x8xbf16> to vector<8x8xf32>
      %145 = arith.mulf %144, %14 : vector<8x8xf32>
      %146 = vector.extract_strided_slice %144 {offsets = [0, 4], sizes = [8, 4], strides = [1, 1]} : vector<8x8xf32> to vector<8x4xf32>
      %147 = vector.extract_strided_slice %144 {offsets = [0, 0], sizes = [8, 4], strides = [1, 1]} : vector<8x8xf32> to vector<8x4xf32>
      %148 = tpu.concatenate %146, %147 in 1 : vector<8x4xf32>, vector<8x4xf32> -> vector<8x8xf32>
      %149 = vector.broadcast %9 : vector<1x8xf32> to vector<8x8xf32>
      %150 = arith.mulf %148, %149 : vector<8x8xf32>
      %151 = arith.mulf %150, %16 : vector<8x8xf32>
      %152 = arith.addf %145, %151 : vector<8x8xf32>
      %153 = vector.broadcast %11 : vector<1x8xf32> to vector<8x8xf32>
      %154 = arith.mulf %152, %153 : vector<8x8xf32>
      %155 = arith.truncf %154 : vector<8x8xf32> to vector<8x8xbf16>
      %cst_55 = arith.constant dense<0.000000e+00> : vector<8x16xf32>
      %156 = tpu.matmul %155, %115, %cst_55 {dimension_numbers = #tpu.dot_dimension_numbers<[1], [1], [0], [0], [0, 0, 1, 0], [], []>} : vector<8x8xbf16>, vector<16x8xbf16>, vector<8x16xf32> -> vector<8x16xf32>
      %157 = arith.truncf %156 : vector<8x16xf32> to vector<8x16xbf16>
      %cst_56 = arith.constant dense<0.000000e+00> : vector<8x8xf32>
      %158 = tpu.matmul %157, %121, %cst_56 {dimension_numbers = #tpu.dot_dimension_numbers<[1], [0], [0], [1], [0, 0, 1, 1], [], []>} : vector<8x16xbf16>, vector<16x8xbf16>, vector<8x8xf32> -> vector<8x8xf32>
      %c0_57 = arith.constant 0 : index
      %c24_58 = arith.constant 24 : index
      %159 = vector.load %arg14[%c0_57, %c24_58] : memref<8x32xf32, #tpu.memory_space<vmem>>, vector<8x8xf32>
      %160 = arith.addf %159, %158 : vector<8x8xf32>
      %c0_59 = arith.constant 0 : index
      %c24_60 = arith.constant 24 : index
      %161 = vector.load %arg14[%c0_59, %c24_60] : memref<8x32xf32, #tpu.memory_space<vmem>>, vector<8x8xf32>
      tpu.vector_store %arg14[%c0_59, %c24_60], %160 {strides = array<i32>} : memref<8x32xf32, #tpu.memory_space<vmem>>, vector<8x8xf32>,
    } else {
    }
    %27 = arith.cmpi eq, %3, %1 : i32
    %28 = arith.extui %27 : i1 to i32
    %c0_i32_15 = arith.constant 0 : i32
    %29 = arith.cmpi ne, %28, %c0_i32_15 : i32
    scf.if %29 {
      %30 = tpu.iota {dimensions = array<i32: 0>} : vector<8x16xi32>
      %31 = tpu.iota {dimensions = array<i32: 1>} : vector<8x16xi32>
      %c8_i32 = arith.constant 8 : i32
      %32 = vector.broadcast %c8_i32 : i32 to vector<8x16xi32>
      %33 = arith.cmpi slt, %31, %32 : vector<8x16xi32>
      %c8_i32_16 = arith.constant 8 : i32
      %34 = vector.broadcast %c8_i32_16 : i32 to vector<8x16xi32>
      %35 = arith.subi %31, %34 : vector<8x16xi32>
      %36 = arith.select %33, %31, %35 : vector<8x16xi1>, vector<8x16xi32>
      %37 = arith.cmpi sle, %36, %30 : vector<8x16xi32>
      %c0_17 = arith.constant 0 : index
      %c0_18 = arith.constant 0 : index
      %c0_19 = arith.constant 0 : index
      %38 = vector.load %arg5[%c0_17, %c0_18, %c0_19] : memref<1x8x16xbf16, #tpu.memory_space<vmem>>, vector<1x8x8xbf16>
      %39 = vector.shape_cast %38 : vector<1x8x8xbf16> to vector<8x8xbf16>
      %40 = arith.extf %39 : vector<8x8xbf16> to vector<8x8xf32>
      %41 = arith.mulf %40, %18 : vector<8x8xf32>
      %42 = vector.extract_strided_slice %40 {offsets = [0, 4], sizes = [8, 4], strides = [1, 1]} : vector<8x8xf32> to vector<8x4xf32>
      %43 = vector.extract_strided_slice %40 {offsets = [0, 0], sizes = [8, 4], strides = [1, 1]} : vector<8x8xf32> to vector<8x4xf32>
      %44 = tpu.concatenate %42, %43 in 1 : vector<8x4xf32>, vector<8x4xf32> -> vector<8x8xf32>
      %45 = vector.broadcast %9 : vector<1x8xf32> to vector<8x8xf32>
      %46 = arith.mulf %44, %45 : vector<8x8xf32>
      %47 = arith.mulf %46, %20 : vector<8x8xf32>
      %48 = arith.addf %41, %47 : vector<8x8xf32>
      %49 = arith.truncf %48 : vector<8x8xf32> to vector<8x8xbf16>
      %c0_20 = arith.constant 0 : index
      %c0_21 = arith.constant 0 : index
      %c0_22 = arith.constant 0 : index
      %50 = vector.load %arg6[%c0_20, %c0_21, %c0_22] : memref<1x8x16xbf16, #tpu.memory_space<vmem>>, vector<1x8x8xbf16>
      %51 = vector.shape_cast %50 : vector<1x8x8xbf16> to vector<8x8xbf16>
      %52 = vector.broadcast %12 : vector<1x8xbf16> to vector<8x8xbf16>
      %53 = arith.mulf %49, %52 : vector<8x8xbf16>
      %54 = vector.extract_strided_slice %49 {offsets = [0, 4], sizes = [8, 4], strides = [1, 1]} : vector<8x8xbf16> to vector<8x4xbf16>
      %55 = vector.extract_strided_slice %49 {offsets = [0, 0], sizes = [8, 4], strides = [1, 1]} : vector<8x8xbf16> to vector<8x4xbf16>
      %56 = tpu.concatenate %54, %55 in 1 : vector<8x4xbf16>, vector<8x4xbf16> -> vector<8x8xbf16>
      %57 = tpu.concatenate %53, %56 in 0 : vector<8x8xbf16>, vector<8x8xbf16> -> vector<16x8xbf16>
      %58 = vector.extract_strided_slice %51 {offsets = [0, 4], sizes = [8, 4], strides = [1, 1]} : vector<8x8xbf16> to vector<8x4xbf16>
      %59 = vector.extract_strided_slice %51 {offsets = [0, 0], sizes = [8, 4], strides = [1, 1]} : vector<8x8xbf16> to vector<8x4xbf16>
      %60 = tpu.concatenate %58, %59 in 1 : vector<8x4xbf16>, vector<8x4xbf16> -> vector<8x8xbf16>
      %61 = vector.broadcast %12 : vector<1x8xbf16> to vector<8x8xbf16>
      %62 = arith.mulf %51, %61 : vector<8x8xbf16>
      %63 = tpu.concatenate %60, %62 in 0 : vector<8x8xbf16>, vector<8x8xbf16> -> vector<16x8xbf16>
      %c0_23 = arith.constant 0 : index
      %c0_24 = arith.constant 0 : index
      %c0_25 = arith.constant 0 : index
      %64 = vector.load %arg4[%c0_23, %c0_24, %c0_25] : memref<1x8x32xbf16, #tpu.memory_space<vmem>>, vector<1x8x8xbf16>
      %65 = vector.shape_cast %64 : vector<1x8x8xbf16> to vector<8x8xbf16>
      %66 = arith.extf %65 : vector<8x8xbf16> to vector<8x8xf32>
      %67 = arith.mulf %66, %14 : vector<8x8xf32>
      %68 = vector.extract_strided_slice %66 {offsets = [0, 4], sizes = [8, 4], strides = [1, 1]} : vector<8x8xf32> to vector<8x4xf32>
      %69 = vector.extract_strided_slice %66 {offsets = [0, 0], sizes = [8, 4], strides = [1, 1]} : vector<8x8xf32> to vector<8x4xf32>
      %70 = tpu.concatenate %68, %69 in 1 : vector<8x4xf32>, vector<8x4xf32> -> vector<8x8xf32>
      %71 = vector.broadcast %9 : vector<1x8xf32> to vector<8x8xf32>
      %72 = arith.mulf %70, %71 : vector<8x8xf32>
      %73 = arith.mulf %72, %16 : vector<8x8xf32>
      %74 = arith.addf %67, %73 : vector<8x8xf32>
      %75 = vector.broadcast %11 : vector<1x8xf32> to vector<8x8xf32>
      %76 = arith.mulf %74, %75 : vector<8x8xf32>
      %77 = arith.truncf %76 : vector<8x8xf32> to vector<8x8xbf16>
      %cst_26 = arith.constant dense<0.000000e+00> : vector<8x16xf32>
      %78 = tpu.matmul %77, %57, %cst_26 {dimension_numbers = #tpu.dot_dimension_numbers<[1], [1], [0], [0], [0, 0, 1, 0], [], []>} : vector<8x8xbf16>, vector<16x8xbf16>, vector<8x16xf32> -> vector<8x16xf32>
      %cst_27 = arith.constant 0.000000e+00 : f32
      %79 = vector.broadcast %cst_27 : f32 to vector<8x16xf32>
      %80 = arith.select %37, %78, %79 : vector<8x16xi1>, vector<8x16xf32>
      %81 = arith.truncf %80 : vector<8x16xf32> to vector<8x16xbf16>
      %cst_28 = arith.constant dense<0.000000e+00> : vector<8x8xf32>
      %82 = tpu.matmul %81, %63, %cst_28 {dimension_numbers = #tpu.dot_dimension_numbers<[1], [0], [0], [1], [0, 0, 1, 1], [], []>} : vector<8x16xbf16>, vector<16x8xbf16>, vector<8x8xf32> -> vector<8x8xf32>
      %c0_29 = arith.constant 0 : index
      %c0_30 = arith.constant 0 : index
      %83 = vector.load %arg14[%c0_29, %c0_30] : memref<8x32xf32, #tpu.memory_space<vmem>>, vector<8x8xf32>
      %84 = arith.addf %83, %82 : vector<8x8xf32>
      %c0_31 = arith.constant 0 : index
      %c0_32 = arith.constant 0 : index
      %85 = vector.load %arg14[%c0_31, %c0_32] : memref<8x32xf32, #tpu.memory_space<vmem>>, vector<8x8xf32>
      tpu.vector_store %arg14[%c0_31, %c0_32], %84 {strides = array<i32>} : memref<8x32xf32, #tpu.memory_space<vmem>>, vector<8x8xf32>,
      %c0_33 = arith.constant 0 : index
      %c0_34 = arith.constant 0 : index
      %c8 = arith.constant 8 : index
      %86 = vector.load %arg4[%c0_33, %c0_34, %c8] : memref<1x8x32xbf16, #tpu.memory_space<vmem>>, vector<1x8x8xbf16>
      %87 = vector.shape_cast %86 : vector<1x8x8xbf16> to vector<8x8xbf16>
      %88 = arith.extf %87 : vector<8x8xbf16> to vector<8x8xf32>
      %89 = arith.mulf %88, %14 : vector<8x8xf32>
      %90 = vector.extract_strided_slice %88 {offsets = [0, 4], sizes = [8, 4], strides = [1, 1]} : vector<8x8xf32> to vector<8x4xf32>
      %91 = vector.extract_strided_slice %88 {offsets = [0, 0], sizes = [8, 4], strides = [1, 1]} : vector<8x8xf32> to vector<8x4xf32>
      %92 = tpu.concatenate %90, %91 in 1 : vector<8x4xf32>, vector<8x4xf32> -> vector<8x8xf32>
      %93 = vector.broadcast %9 : vector<1x8xf32> to vector<8x8xf32>
      %94 = arith.mulf %92, %93 : vector<8x8xf32>
      %95 = arith.mulf %94, %16 : vector<8x8xf32>
      %96 = arith.addf %89, %95 : vector<8x8xf32>
      %97 = vector.broadcast %11 : vector<1x8xf32> to vector<8x8xf32>
      %98 = arith.mulf %96, %97 : vector<8x8xf32>
      %99 = arith.truncf %98 : vector<8x8xf32> to vector<8x8xbf16>
      %cst_35 = arith.constant dense<0.000000e+00> : vector<8x16xf32>
      %100 = tpu.matmul %99, %57, %cst_35 {dimension_numbers = #tpu.dot_dimension_numbers<[1], [1], [0], [0], [0, 0, 1, 0], [], []>} : vector<8x8xbf16>, vector<16x8xbf16>, vector<8x16xf32> -> vector<8x16xf32>
      %cst_36 = arith.constant 0.000000e+00 : f32
      %101 = vector.broadcast %cst_36 : f32 to vector<8x16xf32>
      %102 = arith.select %37, %100, %101 : vector<8x16xi1>, vector<8x16xf32>
      %103 = arith.truncf %102 : vector<8x16xf32> to vector<8x16xbf16>
      %cst_37 = arith.constant dense<0.000000e+00> : vector<8x8xf32>
      %104 = tpu.matmul %103, %63, %cst_37 {dimension_numbers = #tpu.dot_dimension_numbers<[1], [0], [0], [1], [0, 0, 1, 1], [], []>} : vector<8x16xbf16>, vector<16x8xbf16>, vector<8x8xf32> -> vector<8x8xf32>
      %c0_38 = arith.constant 0 : index
      %c8_39 = arith.constant 8 : index
      %105 = vector.load %arg14[%c0_38, %c8_39] : memref<8x32xf32, #tpu.memory_space<vmem>>, vector<8x8xf32>
      %106 = arith.addf %105, %104 : vector<8x8xf32>
      %c0_40 = arith.constant 0 : index
      %c8_41 = arith.constant 8 : index
      %107 = vector.load %arg14[%c0_40, %c8_41] : memref<8x32xf32, #tpu.memory_space<vmem>>, vector<8x8xf32>
      tpu.vector_store %arg14[%c0_40, %c8_41], %106 {strides = array<i32>} : memref<8x32xf32, #tpu.memory_space<vmem>>, vector<8x8xf32>,
      %c0_42 = arith.constant 0 : index
      %c0_43 = arith.constant 0 : index
      %c8_44 = arith.constant 8 : index
      %108 = vector.load %arg5[%c0_42, %c0_43, %c8_44] : memref<1x8x16xbf16, #tpu.memory_space<vmem>>, vector<1x8x8xbf16>
      %109 = vector.shape_cast %108 : vector<1x8x8xbf16> to vector<8x8xbf16>
      %110 = arith.extf %109 : vector<8x8xbf16> to vector<8x8xf32>
      %111 = arith.mulf %110, %18 : vector<8x8xf32>
      %112 = vector.extract_strided_slice %110 {offsets = [0, 4], sizes = [8, 4], strides = [1, 1]} : vector<8x8xf32> to vector<8x4xf32>
      %113 = vector.extract_strided_slice %110 {offsets = [0, 0], sizes = [8, 4], strides = [1, 1]} : vector<8x8xf32> to vector<8x4xf32>
      %114 = tpu.concatenate %112, %113 in 1 : vector<8x4xf32>, vector<8x4xf32> -> vector<8x8xf32>
      %115 = vector.broadcast %9 : vector<1x8xf32> to vector<8x8xf32>
      %116 = arith.mulf %114, %115 : vector<8x8xf32>
      %117 = arith.mulf %116, %20 : vector<8x8xf32>
      %118 = arith.addf %111, %117 : vector<8x8xf32>
      %119 = arith.truncf %118 : vector<8x8xf32> to vector<8x8xbf16>
      %c0_45 = arith.constant 0 : index
      %c0_46 = arith.constant 0 : index
      %c8_47 = arith.constant 8 : index
      %120 = vector.load %arg6[%c0_45, %c0_46, %c8_47] : memref<1x8x16xbf16, #tpu.memory_space<vmem>>, vector<1x8x8xbf16>
      %121 = vector.shape_cast %120 : vector<1x8x8xbf16> to vector<8x8xbf16>
      %122 = vector.broadcast %12 : vector<1x8xbf16> to vector<8x8xbf16>
      %123 = arith.mulf %119, %122 : vector<8x8xbf16>
      %124 = vector.extract_strided_slice %119 {offsets = [0, 4], sizes = [8, 4], strides = [1, 1]} : vector<8x8xbf16> to vector<8x4xbf16>
      %125 = vector.extract_strided_slice %119 {offsets = [0, 0], sizes = [8, 4], strides = [1, 1]} : vector<8x8xbf16> to vector<8x4xbf16>
      %126 = tpu.concatenate %124, %125 in 1 : vector<8x4xbf16>, vector<8x4xbf16> -> vector<8x8xbf16>
      %127 = tpu.concatenate %123, %126 in 0 : vector<8x8xbf16>, vector<8x8xbf16> -> vector<16x8xbf16>
      %128 = vector.extract_strided_slice %121 {offsets = [0, 4], sizes = [8, 4], strides = [1, 1]} : vector<8x8xbf16> to vector<8x4xbf16>
      %129 = vector.extract_strided_slice %121 {offsets = [0, 0], sizes = [8, 4], strides = [1, 1]} : vector<8x8xbf16> to vector<8x4xbf16>
      %130 = tpu.concatenate %128, %129 in 1 : vector<8x4xbf16>, vector<8x4xbf16> -> vector<8x8xbf16>
      %131 = vector.broadcast %12 : vector<1x8xbf16> to vector<8x8xbf16>
      %132 = arith.mulf %121, %131 : vector<8x8xbf16>
      %133 = tpu.concatenate %130, %132 in 0 : vector<8x8xbf16>, vector<8x8xbf16> -> vector<16x8xbf16>
      %c0_48 = arith.constant 0 : index
      %c0_49 = arith.constant 0 : index
      %c16 = arith.constant 16 : index
      %134 = vector.load %arg4[%c0_48, %c0_49, %c16] : memref<1x8x32xbf16, #tpu.memory_space<vmem>>, vector<1x8x8xbf16>
      %135 = vector.shape_cast %134 : vector<1x8x8xbf16> to vector<8x8xbf16>
      %136 = arith.extf %135 : vector<8x8xbf16> to vector<8x8xf32>
      %137 = arith.mulf %136, %14 : vector<8x8xf32>
      %138 = vector.extract_strided_slice %136 {offsets = [0, 4], sizes = [8, 4], strides = [1, 1]} : vector<8x8xf32> to vector<8x4xf32>
      %139 = vector.extract_strided_slice %136 {offsets = [0, 0], sizes = [8, 4], strides = [1, 1]} : vector<8x8xf32> to vector<8x4xf32>
      %140 = tpu.concatenate %138, %139 in 1 : vector<8x4xf32>, vector<8x4xf32> -> vector<8x8xf32>
      %141 = vector.broadcast %9 : vector<1x8xf32> to vector<8x8xf32>
      %142 = arith.mulf %140, %141 : vector<8x8xf32>
      %143 = arith.mulf %142, %16 : vector<8x8xf32>
      %144 = arith.addf %137, %143 : vector<8x8xf32>
      %145 = vector.broadcast %11 : vector<1x8xf32> to vector<8x8xf32>
      %146 = arith.mulf %144, %145 : vector<8x8xf32>
      %147 = arith.truncf %146 : vector<8x8xf32> to vector<8x8xbf16>
      %cst_50 = arith.constant dense<0.000000e+00> : vector<8x16xf32>
      %148 = tpu.matmul %147, %127, %cst_50 {dimension_numbers = #tpu.dot_dimension_numbers<[1], [1], [0], [0], [0, 0, 1, 0], [], []>} : vector<8x8xbf16>, vector<16x8xbf16>, vector<8x16xf32> -> vector<8x16xf32>
      %cst_51 = arith.constant 0.000000e+00 : f32
      %149 = vector.broadcast %cst_51 : f32 to vector<8x16xf32>
      %150 = arith.select %37, %148, %149 : vector<8x16xi1>, vector<8x16xf32>
      %151 = arith.truncf %150 : vector<8x16xf32> to vector<8x16xbf16>
      %cst_52 = arith.constant dense<0.000000e+00> : vector<8x8xf32>
      %152 = tpu.matmul %151, %133, %cst_52 {dimension_numbers = #tpu.dot_dimension_numbers<[1], [0], [0], [1], [0, 0, 1, 1], [], []>} : vector<8x16xbf16>, vector<16x8xbf16>, vector<8x8xf32> -> vector<8x8xf32>
      %c0_53 = arith.constant 0 : index
      %c16_54 = arith.constant 16 : index
      %153 = vector.load %arg14[%c0_53, %c16_54] : memref<8x32xf32, #tpu.memory_space<vmem>>, vector<8x8xf32>
      %154 = arith.addf %153, %152 : vector<8x8xf32>
      %c0_55 = arith.constant 0 : index
      %c16_56 = arith.constant 16 : index
      %155 = vector.load %arg14[%c0_55, %c16_56] : memref<8x32xf32, #tpu.memory_space<vmem>>, vector<8x8xf32>
      tpu.vector_store %arg14[%c0_55, %c16_56], %154 {strides = array<i32>} : memref<8x32xf32, #tpu.memory_space<vmem>>, vector<8x8xf32>,
      %c0_57 = arith.constant 0 : index
      %c0_58 = arith.constant 0 : index
      %c24 = arith.constant 24 : index
      %156 = vector.load %arg4[%c0_57, %c0_58, %c24] : memref<1x8x32xbf16, #tpu.memory_space<vmem>>, vector<1x8x8xbf16>
      %157 = vector.shape_cast %156 : vector<1x8x8xbf16> to vector<8x8xbf16>
      %158 = arith.extf %157 : vector<8x8xbf16> to vector<8x8xf32>
      %159 = arith.mulf %158, %14 : vector<8x8xf32>
      %160 = vector.extract_strided_slice %158 {offsets = [0, 4], sizes = [8, 4], strides = [1, 1]} : vector<8x8xf32> to vector<8x4xf32>
      %161 = vector.extract_strided_slice %158 {offsets = [0, 0], sizes = [8, 4], strides = [1, 1]} : vector<8x8xf32> to vector<8x4xf32>
      %162 = tpu.concatenate %160, %161 in 1 : vector<8x4xf32>, vector<8x4xf32> -> vector<8x8xf32>
      %163 = vector.broadcast %9 : vector<1x8xf32> to vector<8x8xf32>
      %164 = arith.mulf %162, %163 : vector<8x8xf32>
      %165 = arith.mulf %164, %16 : vector<8x8xf32>
      %166 = arith.addf %159, %165 : vector<8x8xf32>
      %167 = vector.broadcast %11 : vector<1x8xf32> to vector<8x8xf32>
      %168 = arith.mulf %166, %167 : vector<8x8xf32>
      %169 = arith.truncf %168 : vector<8x8xf32> to vector<8x8xbf16>
      %cst_59 = arith.constant dense<0.000000e+00> : vector<8x16xf32>
      %170 = tpu.matmul %169, %127, %cst_59 {dimension_numbers = #tpu.dot_dimension_numbers<[1], [1], [0], [0], [0, 0, 1, 0], [], []>} : vector<8x8xbf16>, vector<16x8xbf16>, vector<8x16xf32> -> vector<8x16xf32>
      %cst_60 = arith.constant 0.000000e+00 : f32
      %171 = vector.broadcast %cst_60 : f32 to vector<8x16xf32>
      %172 = arith.select %37, %170, %171 : vector<8x16xi1>, vector<8x16xf32>
      %173 = arith.truncf %172 : vector<8x16xf32> to vector<8x16xbf16>
      %cst_61 = arith.constant dense<0.000000e+00> : vector<8x8xf32>
      %174 = tpu.matmul %173, %133, %cst_61 {dimension_numbers = #tpu.dot_dimension_numbers<[1], [0], [0], [1], [0, 0, 1, 1], [], []>} : vector<8x16xbf16>, vector<16x8xbf16>, vector<8x8xf32> -> vector<8x8xf32>
      %c0_62 = arith.constant 0 : index
      %c24_63 = arith.constant 24 : index
      %175 = vector.load %arg14[%c0_62, %c24_63] : memref<8x32xf32, #tpu.memory_space<vmem>>, vector<8x8xf32>
      %176 = arith.addf %175, %174 : vector<8x8xf32>
      %c0_64 = arith.constant 0 : index
      %c24_65 = arith.constant 24 : index
      %177 = vector.load %arg14[%c0_64, %c24_65] : memref<8x32xf32, #tpu.memory_space<vmem>>, vector<8x8xf32>
      tpu.vector_store %arg14[%c0_64, %c24_65], %176 {strides = array<i32>} : memref<8x32xf32, #tpu.memory_space<vmem>>, vector<8x8xf32>,
      %c0_66 = arith.constant 0 : index
      %c0_67 = arith.constant 0 : index
      %178 = vector.load %arg14[%c0_66, %c0_67] : memref<8x32xf32, #tpu.memory_space<vmem>>, vector<8x32xf32>
      %179 = vector.extract_strided_slice %178 {offsets = [0, 0], sizes = [8, 8], strides = [1, 1]} : vector<8x32xf32> to vector<8x8xf32>
      %cst_68 = arith.constant dense<0.000000e+00> : vector<8xf32>
      %180 = vector.multi_reduction <add>, %179, %cst_68 [1] : vector<8x8xf32> to vector<8xf32>
      %181 = vector.shape_cast %180 : vector<8xf32> to vector<8x1xf32>
      %cst_69 = arith.constant 8.000000e+00 : f32
      %182 = vector.broadcast %cst_69 : f32 to vector<8x1xf32>
      %183 = arith.divf %181, %182 : vector<8x1xf32>
      %184 = vector.broadcast %183 : vector<8x1xf32> to vector<8x8xf32>
      %185 = arith.subf %179, %184 : vector<8x8xf32>
      %186 = arith.mulf %185, %185 : vector<8x8xf32>
      %cst_70 = arith.constant dense<0.000000e+00> : vector<8xf32>
      %187 = vector.multi_reduction <add>, %186, %cst_70 [1] : vector<8x8xf32> to vector<8xf32>
      %188 = vector.shape_cast %187 : vector<8xf32> to vector<8x1xf32>
      %cst_71 = arith.constant 8.000000e+00 : f32
      %189 = vector.broadcast %cst_71 : f32 to vector<8x1xf32>
      %190 = arith.divf %188, %189 : vector<8x1xf32>
      %191 = vector.broadcast %183 : vector<8x1xf32> to vector<8x8xf32>
      %192 = arith.subf %179, %191 : vector<8x8xf32>
      %cst_72 = arith.constant 9.99999974E-6 : f32
      %193 = vector.broadcast %cst_72 : f32 to vector<8x1xf32>
      %194 = arith.addf %190, %193 : vector<8x1xf32>
      %195 = math.rsqrt %194 : vector<8x1xf32>
      %196 = vector.broadcast %195 : vector<8x1xf32> to vector<8x8xf32>
      %197 = arith.mulf %192, %196 : vector<8x8xf32>
      %198 = vector.extract_strided_slice %178 {offsets = [0, 8], sizes = [8, 8], strides = [1, 1]} : vector<8x32xf32> to vector<8x8xf32>
      %cst_73 = arith.constant dense<0.000000e+00> : vector<8xf32>
      %199 = vector.multi_reduction <add>, %198, %cst_73 [1] : vector<8x8xf32> to vector<8xf32>
      %200 = vector.shape_cast %199 : vector<8xf32> to vector<8x1xf32>
      %cst_74 = arith.constant 8.000000e+00 : f32
      %201 = vector.broadcast %cst_74 : f32 to vector<8x1xf32>
      %202 = arith.divf %200, %201 : vector<8x1xf32>
      %203 = vector.broadcast %202 : vector<8x1xf32> to vector<8x8xf32>
      %204 = arith.subf %198, %203 : vector<8x8xf32>
      %205 = arith.mulf %204, %204 : vector<8x8xf32>
      %cst_75 = arith.constant dense<0.000000e+00> : vector<8xf32>
      %206 = vector.multi_reduction <add>, %205, %cst_75 [1] : vector<8x8xf32> to vector<8xf32>
      %207 = vector.shape_cast %206 : vector<8xf32> to vector<8x1xf32>
      %cst_76 = arith.constant 8.000000e+00 : f32
      %208 = vector.broadcast %cst_76 : f32 to vector<8x1xf32>
      %209 = arith.divf %207, %208 : vector<8x1xf32>
      %210 = vector.broadcast %202 : vector<8x1xf32> to vector<8x8xf32>
      %211 = arith.subf %198, %210 : vector<8x8xf32>
      %cst_77 = arith.constant 9.99999974E-6 : f32
      %212 = vector.broadcast %cst_77 : f32 to vector<8x1xf32>
      %213 = arith.addf %209, %212 : vector<8x1xf32>
      %214 = math.rsqrt %213 : vector<8x1xf32>
      %215 = vector.broadcast %214 : vector<8x1xf32> to vector<8x8xf32>
      %216 = arith.mulf %211, %215 : vector<8x8xf32>
      %217 = vector.extract_strided_slice %178 {offsets = [0, 16], sizes = [8, 8], strides = [1, 1]} : vector<8x32xf32> to vector<8x8xf32>
      %cst_78 = arith.constant dense<0.000000e+00> : vector<8xf32>
      %218 = vector.multi_reduction <add>, %217, %cst_78 [1] : vector<8x8xf32> to vector<8xf32>
      %219 = vector.shape_cast %218 : vector<8xf32> to vector<8x1xf32>
      %cst_79 = arith.constant 8.000000e+00 : f32
      %220 = vector.broadcast %cst_79 : f32 to vector<8x1xf32>
      %221 = arith.divf %219, %220 : vector<8x1xf32>
      %222 = vector.broadcast %221 : vector<8x1xf32> to vector<8x8xf32>
      %223 = arith.subf %217, %222 : vector<8x8xf32>
      %224 = arith.mulf %223, %223 : vector<8x8xf32>
      %cst_80 = arith.constant dense<0.000000e+00> : vector<8xf32>
      %225 = vector.multi_reduction <add>, %224, %cst_80 [1] : vector<8x8xf32> to vector<8xf32>
      %226 = vector.shape_cast %225 : vector<8xf32> to vector<8x1xf32>
      %cst_81 = arith.constant 8.000000e+00 : f32
      %227 = vector.broadcast %cst_81 : f32 to vector<8x1xf32>
      %228 = arith.divf %226, %227 : vector<8x1xf32>
      %229 = vector.broadcast %221 : vector<8x1xf32> to vector<8x8xf32>
      %230 = arith.subf %217, %229 : vector<8x8xf32>
      %cst_82 = arith.constant 9.99999974E-6 : f32
      %231 = vector.broadcast %cst_82 : f32 to vector<8x1xf32>
      %232 = arith.addf %228, %231 : vector<8x1xf32>
      %233 = math.rsqrt %232 : vector<8x1xf32>
      %234 = vector.broadcast %233 : vector<8x1xf32> to vector<8x8xf32>
      %235 = arith.mulf %230, %234 : vector<8x8xf32>
      %236 = vector.extract_strided_slice %178 {offsets = [0, 24], sizes = [8, 8], strides = [1, 1]} : vector<8x32xf32> to vector<8x8xf32>
      %cst_83 = arith.constant dense<0.000000e+00> : vector<8xf32>
      %237 = vector.multi_reduction <add>, %236, %cst_83 [1] : vector<8x8xf32> to vector<8xf32>
      %238 = vector.shape_cast %237 : vector<8xf32> to vector<8x1xf32>
      %cst_84 = arith.constant 8.000000e+00 : f32
      %239 = vector.broadcast %cst_84 : f32 to vector<8x1xf32>
      %240 = arith.divf %238, %239 : vector<8x1xf32>
      %241 = vector.broadcast %240 : vector<8x1xf32> to vector<8x8xf32>
      %242 = arith.subf %236, %241 : vector<8x8xf32>
      %243 = arith.mulf %242, %242 : vector<8x8xf32>
      %cst_85 = arith.constant dense<0.000000e+00> : vector<8xf32>
      %244 = vector.multi_reduction <add>, %243, %cst_85 [1] : vector<8x8xf32> to vector<8xf32>
      %245 = vector.shape_cast %244 : vector<8xf32> to vector<8x1xf32>
      %cst_86 = arith.constant 8.000000e+00 : f32
      %246 = vector.broadcast %cst_86 : f32 to vector<8x1xf32>
      %247 = arith.divf %245, %246 : vector<8x1xf32>
      %248 = vector.broadcast %240 : vector<8x1xf32> to vector<8x8xf32>
      %249 = arith.subf %236, %248 : vector<8x8xf32>
      %cst_87 = arith.constant 9.99999974E-6 : f32
      %250 = vector.broadcast %cst_87 : f32 to vector<8x1xf32>
      %251 = arith.addf %247, %250 : vector<8x1xf32>
      %252 = math.rsqrt %251 : vector<8x1xf32>
      %253 = vector.broadcast %252 : vector<8x1xf32> to vector<8x8xf32>
      %254 = arith.mulf %249, %253 : vector<8x8xf32>
      %255 = tpu.concatenate %197, %216, %235, %254 in 1 : vector<8x8xf32>, vector<8x8xf32>, vector<8x8xf32>, vector<8x8xf32> -> vector<8x32xf32>
      %c0_88 = arith.constant 0 : index
      %c0_89 = arith.constant 0 : index
      %256 = vector.load %arg11[%c0_88, %c0_89] : memref<1x32xf32, #tpu.memory_space<vmem>>, vector<1x32xf32>
      %257 = vector.broadcast %256 : vector<1x32xf32> to vector<8x32xf32>
      %258 = arith.mulf %255, %257 : vector<8x32xf32>
      %c0_90 = arith.constant 0 : index
      %c0_91 = arith.constant 0 : index
      %259 = vector.load %arg12[%c0_90, %c0_91] : memref<1x32xf32, #tpu.memory_space<vmem>>, vector<1x32xf32>
      %260 = vector.broadcast %259 : vector<1x32xf32> to vector<8x32xf32>
      %261 = arith.addf %258, %260 : vector<8x32xf32>
      %262 = arith.truncf %261 : vector<8x32xf32> to vector<8x32xbf16>
      %c0_92 = arith.constant 0 : index
      %c0_93 = arith.constant 0 : index
      %c0_94 = arith.constant 0 : index
      %263 = vector.load %arg13[%c0_92, %c0_93, %c0_94] : memref<1x8x32xbf16, #tpu.memory_space<vmem>>, vector<1x8x32xbf16>
      %264 = vector.shape_cast %263 : vector<1x8x32xbf16> to vector<8x32xbf16>
      %265 = vector.shape_cast %262 : vector<8x32xbf16> to vector<1x8x32xbf16>
      tpu.vector_store %arg13[%c0_92, %c0_93, %c0_94], %265 {strides = array<i32>} : memref<1x8x32xbf16, #tpu.memory_space<vmem>>, vector<1x8x32xbf16>,
    } else {
    }
    return
  }
  func.func @transform_0(%arg0: i32, %arg1: i32, %arg2: memref<1xi32, #tpu.memory_space<smem>>, %arg3: memref<1xi32, #tpu.memory_space<smem>>) -> (i32, i32, i32) {
    %0 = arith.index_cast %arg1 : i32 to index
    %1 = memref.load %arg2[%0] : memref<1xi32, #tpu.memory_space<smem>>
    %c0_i32 = arith.constant 0 : i32
    %c0_i32_0 = arith.constant 0 : i32
    return %arg0, %1, %c0_i32 : i32, i32, i32
  }
  func.func @transform_1(%arg0: i32, %arg1: i32, %arg2: memref<1xi32, #tpu.memory_space<smem>>, %arg3: memref<1xi32, #tpu.memory_space<smem>>) -> (i32, i32, i32) {
    %0 = arith.index_cast %arg1 : i32 to index
    %1 = memref.load %arg3[%0] : memref<1xi32, #tpu.memory_space<smem>>
    %c0_i32 = arith.constant 0 : i32
    %c0_i32_0 = arith.constant 0 : i32
    return %arg0, %1, %c0_i32 : i32, i32, i32
  }
  func.func @transform_2(%arg0: i32, %arg1: i32, %arg2: memref<1xi32, #tpu.memory_space<smem>>, %arg3: memref<1xi32, #tpu.memory_space<smem>>) -> (i32, i32, i32) {
    %0 = arith.index_cast %arg1 : i32 to index
    %1 = memref.load %arg3[%0] : memref<1xi32, #tpu.memory_space<smem>>
    %c0_i32 = arith.constant 0 : i32
    %c0_i32_0 = arith.constant 0 : i32
    return %arg0, %1, %c0_i32 : i32, i32, i32
  }
  func.func @transform_3(%arg0: i32, %arg1: i32, %arg2: memref<1xi32, #tpu.memory_space<smem>>, %arg3: memref<1xi32, #tpu.memory_space<smem>>) -> (i32, i32, i32) {
    %0 = arith.index_cast %arg1 : i32 to index
    %1 = memref.load %arg2[%0] : memref<1xi32, #tpu.memory_space<smem>>
    %c0_i32 = arith.constant 0 : i32
    %c0_i32_0 = arith.constant 0 : i32
    return %arg0, %1, %c0_i32 : i32, i32, i32
  }
  func.func @transform_4(%arg0: i32, %arg1: i32, %arg2: memref<1xi32, #tpu.memory_space<smem>>, %arg3: memref<1xi32, #tpu.memory_space<smem>>) -> (i32, i32, i32) {
    %0 = arith.index_cast %arg1 : i32 to index
    %1 = memref.load %arg2[%0] : memref<1xi32, #tpu.memory_space<smem>>
    %c0_i32 = arith.constant 0 : i32
    %c0_i32_0 = arith.constant 0 : i32
    return %arg0, %1, %c0_i32 : i32, i32, i32
  }
  func.func @transform_5(%arg0: i32, %arg1: i32, %arg2: memref<1xi32, #tpu.memory_space<smem>>, %arg3: memref<1xi32, #tpu.memory_space<smem>>) -> (i32, i32, i32) {
    %0 = arith.index_cast %arg1 : i32 to index
    %1 = memref.load %arg3[%0] : memref<1xi32, #tpu.memory_space<smem>>
    %c0_i32 = arith.constant 0 : i32
    %c0_i32_0 = arith.constant 0 : i32
    return %arg0, %1, %c0_i32 : i32, i32, i32
  }
  func.func @transform_6(%arg0: i32, %arg1: i32, %arg2: memref<1xi32, #tpu.memory_space<smem>>, %arg3: memref<1xi32, #tpu.memory_space<smem>>) -> (i32, i32, i32) {
    %0 = arith.index_cast %arg1 : i32 to index
    %1 = memref.load %arg3[%0] : memref<1xi32, #tpu.memory_space<smem>>
    %c0_i32 = arith.constant 0 : i32
    %c0_i32_0 = arith.constant 0 : i32
    return %arg0, %1, %c0_i32 : i32, i32, i32
  }
  func.func @transform_7(%arg0: i32, %arg1: i32, %arg2: memref<1xi32, #tpu.memory_space<smem>>, %arg3: memref<1xi32, #tpu.memory_space<smem>>) -> (i32, i32) {
    %c0_i32 = arith.constant 0 : i32
    %c0_i32_0 = arith.constant 0 : i32
    %c0_i32_1 = arith.constant 0 : i32
    return %c0_i32, %c0_i32_0 : i32, i32
  }
  func.func @transform_8(%arg0: i32, %arg1: i32, %arg2: memref<1xi32, #tpu.memory_space<smem>>, %arg3: memref<1xi32, #tpu.memory_space<smem>>) -> (i32, i32) {
    %c0_i32 = arith.constant 0 : i32
    %c0_i32_0 = arith.constant 0 : i32
    %c0_i32_1 = arith.constant 0 : i32
    return %c0_i32, %c0_i32_0 : i32, i32
  }
  func.func @transform_9(%arg0: i32, %arg1: i32, %arg2: memref<1xi32, #tpu.memory_space<smem>>, %arg3: memref<1xi32, #tpu.memory_space<smem>>) -> (i32, i32, i32) {
    %0 = arith.index_cast %arg1 : i32 to index
    %1 = memref.load %arg2[%0] : memref<1xi32, #tpu.memory_space<smem>>
    %c0_i32 = arith.constant 0 : i32
    %c0_i32_0 = arith.constant 0 : i32
    return %arg0, %1, %c0_i32 : i32, i32, i32
  }
}

</mosaic_0001>

<bundles_post_ra>
// kernel: _lambda_.5
= control target key start
LH: loop header
LB: loop body
LE: loop exit
PB: predicated region body
PF: predicated region fallthrough
CT: control target
= control target key end

     0   :  { %v157_v1 = vmov 0.0   ;;  %vm158_vm0 = vmmov 0   ;;  %vm17_vm1 = vcmask 261120   ;;  %s203_s0 = inlined_call_operand.vmem [shape: bf16[16,32], index: 0, kind: input, shape index: {}]   ;;  %s204_s1 = inlined_call_operand.vmem [shape: bf16[32,32], index: 1, kind: input, shape index: {}]   ;;  %s205_s2 = inlined_call_operand.hbm [shape: f32[16,32], index: 2, kind: output, shape index: {}]  }
   0x1   :  { %v130_v0 = vld [vmem:[%s204_s1] sm:$0xff]   ;;  %117 = vmatprep.subr.bf16.mxu0 %v157_v1  ;;  %v131_v2 = vld [vmem:[%s204_s1 + $0x8] sm:$0xff]   ;;  %121 = vmatprep.mubr.msk.bf16.mxu0 %vm158_vm0, %v157_v1  ;;  %18 = vst.msk [vmem:[#allocation2] sm:$0xff] %vm17_vm1, %v157_v1  ;;  %19 = vst.msk [vmem:[#allocation2 + $0x8] sm:$0xff] %vm17_vm1, %v157_v1 }
   0x2   :  { %118 = vmatpush3.bf16.msra.mxu0 %v130_v0 }
   0x3   :  { %119 = vmatprep.subr.bf16.mxu0 %v157_v1 }
   0x4   :  { %7 = vsyncpa [#allocation3], 0  ;;  %v132_v3 = vld [vmem:[%s203_s0] sm:$0xff]   ;;  %s159_s15 = smov [#allocation2]  }
   0x5   :  { %s99_s16 = sshll.u32 %s159_s15, 4  ;;  %s100_s16 = int_to_ptr.vmem [resolvable:$true] %s99_s16 }
   0x6   :  { %120 = vmatpush3.bf16.msra.mxu0 %v131_v2  ;;  %s133_s1 = scalar_lea.vmem %s100_s16, 256  ;;  %p138_p1 = scmp.lt.s32.totalorder %s100_s16, %s100_s16 }
   0x7   :  { %p134_p0 = scmp.ne.s32.totalorder %s100_s16, %s133_s1  ;;  %p139_p2 = scmp.lt.s32.totalorder %s133_s1, %s133_s1 }
   0x8   :  { %v20_v4 = vld [vmem:[#allocation2] sm:$0xff]  ;;  %v21_v6 = vld [vmem:[#allocation2 + $0x8] sm:$0xff] }
   0x9   :  { %122 = vmatmul.mubr.msk.bf16.vlgmr.msra.gmra.mrb[0].mxu0 %vm17_vm1, %v132_v3  ;;  %p140_p3 = por %p139_p2, %p138_p1 }
   0xb   :  { %p141_p4 = pnand %p140_p3, %p134_p0 }
  0xdc   :  { %v83_v5 = vpop.f32.mrb[0].mxu0 }
  0xdd   :  { %v90_v7 = vadd.f32 %v83_v5, %v20_v4  ;;  %v123_v8 = vpop.f32.mrb[1].mxu0 }
  0xde   :  { %v86_v9 = vpop.f32.mrb[2].mxu0 }
  0xdf   :  { %92 = vst.msk [vmem:[#allocation2] sm:$0xff] %vm17_vm1, %v90_v7  ;;  %v91_v10 = vadd.f32 %v86_v9, %v21_v6  ;;  %v124_v11 = vpop.f32.mrb[3].mxu0 }
  0xe1   :  { %93 = vst.msk [vmem:[#allocation2 + $0x8] sm:$0xff] %vm17_vm1, %v91_v10 }
  0xe2   :  { %144 = shalt.err (!%p141_p4)
}
  0xe3   :  { %s145_s18 = scalar_lea.hbm %s205_s2, 256 }
  0xe4   :  { %p146_p5 = scmp.ne.s32.totalorder %s205_s2, %s145_s18  ;;  %p149_p6 = scmp.lt.u32.totalorder %s145_s18, %s205_s2 }
  0xe6   :  { %p151_p7 = pnand %p149_p6, %p146_p5 }
  0xe8   :  { %154 = shalt.err (!%p151_p7)
}
  0xe9   :  { %s160_s23 = smov 128   ;;  %s161_s24 = smov 8  }
  0xea   :  { %105 = dma.vmem_to_hbm [thread:$0]  %s100_s16, 256, %s205_s2, [#allocation3], %s160_s23, %s160_s23, %s161_s24  }
  0xeb   :  { %155 = dma.done.wait [#allocation3], 256  }
  0xec   :  { %156 = vsyncadd [#allocation3], 4294967040 }
  0xed   :  { %109 = vsyncpa [#allocation3], 1 }

// kernel: _lambda_.3
= control target key start
LH: loop header
LB: loop body
LE: loop exit
PB: predicated region body
PF: predicated region fallthrough
CT: control target
= control target key end

     0   :  { %vm16_vm0 = vcmask 523264   ;;  %v138_v0 = vmov 0.0   ;;  %vm139_vm1 = vmmov 0   ;;  %vm44_vm2 = vcmask 261120   ;;  %s174_s1 = inlined_call_operand.vmem [shape: bf16[32,64], index: 1, kind: input, shape index: {}]   ;;  %s175_s0 = inlined_call_operand.vmem [shape: bf16[16,32], index: 0, kind: input, shape index: {}]   ;;  %s176_s2 = inlined_call_operand.vmem [shape: bf16[16,64], index: 2, kind: output, shape index: {}]  }
   0x1   :  { %125 = vmatprep.subr.bf16.mxu0 %v138_v0  ;;  %v135_v1 = vld [vmem:[%s174_s1] sm:$0xff]   ;;  %129 = vmatprep.mubr.msk.bf16.mxu0 %vm139_vm1, %v138_v0  ;;  %17 = vst.msk [vmem:[#allocation2] sm:$0xff] %vm16_vm0, %v138_v0  ;;  %18 = vst.msk [vmem:[#allocation2 + $0x8] sm:$0xff] %vm16_vm0, %v138_v0  ;;  %v136_v2 = vld [vmem:[%s174_s1 + $0x8] sm:$0xff]   ;;  %vm107_vm3 = vcmask 519168  }
   0x2   :  { %126 = vmatpush3.bf16.msra.mxu0 %v135_v1  ;;  %v137_v3 = vld [vmem:[%s175_s0] sm:$0xff]  }
   0x3   :  { %127 = vmatprep.subr.bf16.mxu0 %v138_v0 }
   0x6   :  { %128 = vmatpush3.bf16.msra.mxu0 %v136_v2 }
   0x8   :  { %v19_v4 = vld [vmem:[#allocation2] sm:$0xff]  ;;  %v20_v6 = vld [vmem:[#allocation2 + $0x8] sm:$0xff] }
   0x9   :  { %130 = vmatmul.mubr.msk.bf16.vlgmr.msra.gmra.mrb[0].mxu0 %vm44_vm2, %v137_v3 }
  0xdc   :  { %v82_v5 = vpop.f32.mrb[0].mxu0 }
  0xdd   :  { %v89_v7 = vadd.f32 %v82_v5, %v19_v4  ;;  %v131_v8 = vpop.f32.mrb[1].mxu0 }
  0xde   :  { %v85_v9 = vpop.f32.mrb[2].mxu0 }
  0xdf   :  { %92 = vst.msk [vmem:[#allocation2] sm:$0xff] %vm16_vm0, %v89_v7  ;;  %v90_v10 = vadd.f32 %v85_v9, %v20_v6  ;;  %v132_v11 = vpop.f32.mrb[3].mxu0 }
  0xe1   :  { %93 = vst.msk [vmem:[#allocation2 + $0x8] sm:$0xff] %vm16_vm0, %v90_v10 }
  0xe6   :  { %v97_v12 = vld [vmem:[#allocation2] sm:$0xff] }
  0xe7   :  { %v120_v13 = vpack.c.bf16 %v97_v12, %v97_v12 }
  0xe8   :  { %v98_v14 = vld [vmem:[#allocation2 + $0x8] sm:$0xff] }
  0xe9   :  { %108 = vst.msk [vmem:[%s176_s2] sm:$0xf] %vm107_vm3, %v120_v13  ;;  %v121_v15 = vpack.c.bf16 %v98_v14, %v98_v14 }
  0xeb   :  { %109 = vst.msk [vmem:[%s176_s2 + $0x4] sm:$0xf] %vm107_vm3, %v121_v15 }

// kernel: _lambda_.4
= control target key start
LH: loop header
LB: loop body
LE: loop exit
PB: predicated region body
PF: predicated region fallthrough
CT: control target
= control target key end

     0   :  { %s2462_s21 = smov 0   ;;  %s2464_s22 = smov 0   ;;  %s2890_s0 = inlined_call_operand.<no memory space> [shape: s32[1], index: 0, kind: input, shape index: {}, may-alias: {0,1}]   ;;  %s2891_s1 = inlined_call_operand.<no memory space> [shape: s32[1], index: 1, kind: input, shape index: {}, may-alias: {0,1}]   ;;  %s2892_s2 = inlined_call_operand.vmem [shape: bf16[2,8,32], index: 2, kind: input, shape index: {}]   ;;  %s2893_s3 = inlined_call_operand.vmem [shape: bf16[2,8,16], index: 3, kind: input, shape index: {}]   ;;  %s2894_s4 = inlined_call_operand.vmem [shape: bf16[2,8,16], index: 4, kind: input, shape index: {}]   ;;  %s2895_s5 = inlined_call_operand.vmem [shape: f32[2,8,8], index: 5, kind: input, shape index: {}, may-alias: {5,7}]   ;;  %s2896_s6 = inlined_call_operand.vmem [shape: f32[2,8,8], index: 6, kind: input, shape index: {}, may-alias: {6,8}]   ;;  %s2897_s7 = inlined_call_operand.vmem [shape: f32[2,8,8], index: 7, kind: input, shape index: {}, may-alias: {5,7}]   ;;  %s2898_s8 = inlined_call_operand.vmem [shape: f32[2,8,8], index: 8, kind: input, shape index: {}, may-alias: {6,8}]   ;;  %s2899_s9 = inlined_call_operand.vmem [shape: f32[1,32], index: 9, kind: input, shape index: {}]   ;;  %s2900_s10 = inlined_call_operand.vmem [shape: f32[1,32], index: 10, kind: input, shape index: {}]   ;;  %s2901_s11 = inlined_call_operand.vmem [shape: bf16[2,8,32], index: 11, kind: output, shape index: {}]  }
   0x1   :  { %2903 = sst [smem:[#allocation8_spill]] %s2892_s2  ;;  %s2466_s23 = smov 0  }
   0x2   :  { %2904 = sst [smem:[#allocation9_spill]] %s2893_s3 }
   0x3   :  { %16 = sst [smem:[#allocation4]] %s2890_s0 }
   0x4   :  { %17 = sst [smem:[#allocation5]] %s2891_s1 }
   0x5 LB: > { %2905 = sst [smem:[#allocation6_spill]] %s2362_s22  ;;  %s35_s0 = sadd.s32 1, %s2362_s22  ;;  %s2366_s23 = sphi %s2466_s23, %s23_s23   ;;  %s2362_s22 = sphi %s2464_s22, %s2910_s22   ;;  %s2358_s21 = sphi %s2462_s21, %s2909_s21  }
   0x6   : > { %p2107_p0 = scmp.ge.s32.totalorder %s2366_s23, 1  ;;  %p37_p1 = scmp.ge.s32.totalorder %s35_s0, 2 }
   0x7   : > { %p423_p2 = scmp.lt.s32.totalorder %s2366_s23, 3 }
   0x8   : > { %s2912_s0 = smov (%p37_p1, %s35_s0), 0 }
   0x9   : > { %2906 = sst [smem:[#allocation7_spill]] %s2912_s0  ;;  %p424_p3 = pnand %p2107_p0, %p423_p2 }
   0xa   : > { %s2480_s1 = sld [smem:[#allocation4]] (!%p424_p3)  ;;  %v588_v0 = vlaneseq (!%p424_p3)  ;;  %p514_p4 = scmp.lt.s32.totalorder (!%p424_p3), %s2358_s21, 1  ;;  %v2368_v2 = vmov (!%p424_p3), 1.0  }
   0xb   : > { %427 = sbr.rel (%p424_p3) target bundleno = 2944 (0xb80), region = 56  ;;  %s2482_s24 = sld [smem:[#allocation5]] (!%p424_p3) }
   0xc   : > { %v2485_v1 = vand.u32 (!%p424_p3), 127, %v588_v0  ;;  %s2907_s2 = sld [smem:[#allocation8_spill]] (!%p424_p3)  ;;  %s2908_s3 = sld [smem:[#allocation9_spill]] (!%p424_p3) }
   0xe   : > { %vm590_vm0 = vcmp.lt.s32.totalorder (!%p424_p3), %v2485_v1, 4 }
   0xf   : > { %v2488_v3 = vsel (!%p424_p3), %vm590_vm0, -1.0, %v2368_v2 }
  0x10   : > { %p516_p5 = scmp.lt.s32.totalorder (!%p424_p3), %s2480_s1, 0  ;;  %v2492_v4 = vsub.f32 (!%p424_p3), 0.0, %v2488_v3  ;;  %v2496_v5 = vpack.c.bf16 (!%p424_p3), %v2488_v3, %v2488_v3 }
  0x11   : > { %p525_p6 = scmp.lt.s32.totalorder (!%p424_p3), %s2482_s24, 0  ;;  %p2116_p7 = scmp.ne.s32.totalorder (!%p424_p3), %s2482_s24, 0 }
  0x12   : > { %s2914_s21 = smov (!%p514_p4, %s2358_s21), 1  ;;  %vm602_vm1 = vcmask (!%p2116_p7), 261120   ;;  %v2369_v10 = vmov (!%p2116_p7), 0.0  }
  0x13   : > { %s517_s25 = scalar_select %p516_p5, %s2480_s1, 0 }
  0x14   : > { %s526_s26 = scalar_select %p525_p6, %s2482_s24, 0 }
  0x15   : > { %s518_s27 = sadd.s32 %s517_s25, %s2914_s21  ;;  %603 = vst.msk [vmem:[#allocation2] sm:$0xff] (!%p2116_p7), %vm602_vm1, %v2369_v10 }
  0x16   : > { %s2108_s28 = sshll.u32 %s518_s27, 2  ;;  %s527_s29 = sadd.s32 %s526_s26, %s2914_s21 }
  0x17   : > { %s2504_s13 = scalar_lea.vmem %s2907_s2, %s2108_s28  ;;  %s2109_s14 = sshll.u32 %s527_s29, 2 }
  0x18   : > { %s2509_s17 = scalar_lea.vmem %s2908_s3, %s2109_s14  ;;  %s2514_s20 = scalar_lea.vmem %s2894_s4, %s2109_s14 }
  0x19   : > { %s2111_s0 = sshll.u32 %s518_s27, 3  ;;  %s2113_s2 = sshll.u32 %s527_s29, 3 }
  0x1a   : > { %s547_s21 = scalar_lea.vmem %s2895_s5, %s2111_s0  ;;  %s556_s12 = scalar_lea.vmem %s2896_s6, %s2111_s0 }
  0x1b   : > { %v2522_v6 = vld [vmem:[%s547_s21] sm:$0xff]  ;;  %s565_s18 = scalar_lea.vmem %s2897_s7, %s2113_s2  ;;  %s574_s27 = scalar_lea.vmem %s2898_s8, %s2113_s2 }
  0x1c   : > { %v2524_v7 = vld [vmem:[%s556_s12] sm:$0xff]  ;;  %s2535_s25 = scalar_lea.vmem %s2901_s11, %s2108_s28  ;;  %601 = sbr.rel (%p2116_p7) target bundleno = 35 (0x23), region = 60 }
  0x1d   : > { %v2537_v8 = vld [vmem:[%s565_s18] sm:$0xff] }
  0x1e   : > { %v2539_v9 = vld [vmem:[%s574_s27] sm:$0xff] }
  0x23 PF: > { %p2117_p8 = scmp.ge.s32.totalorder %s2482_s24, %s2480_s1 }
  0x24   : > { %v608_v11 = vld [vmem:[%s2509_s17] sm:$0xf] (!%p2117_p8)  ;;  %s2370_s2 = smov (!%p2117_p8), 124   ;;  %s2371_s3 = smov (!%p2117_p8), 116   ;;  %vm618_vm2 = vcmask (!%p2117_p8), 31744   ;;  %v2373_v19 = vmov (!%p2117_p8), 0.0  }
  0x25   : > { %607 = sbr.rel (%p2117_p8) target bundleno = 1210 (0x4ba), region = 64  ;;  %v893_v12 = vld [vmem:[%s2509_s17] sm:$0xf] (!%p2117_p8)  ;;  %v609_v13 = vunpack.c.l.bf16 (!%p2117_p8), %v608_v11  ;;  %s2372_s0 = smov (!%p2117_p8), 4   ;;  %2184 = vmatprep.subr.bf16.mxu0 (!%p2117_p8), %v2373_v19  ;;  %2190 = vmatprep.subr.bf16.mxu1 (!%p2117_p8), %v2373_v19  ;;  %vm2374_vm3 = vmmov (!%p2117_p8), 0   ;;  %vm636_vm4 = vcmask (!%p2117_p8), 1043456  }
  0x26   : > { %v894_v14 = vunpack.c.l.bf16 (!%p2117_p8), %v893_v12  ;;  %v657_v25 = vld [vmem:[%s2504_s13] sm:$0xf] (!%p2117_p8)  ;;  %2186 = vmatprep.mubr.msk.bf16.mxu0 (!%p2117_p8), %vm2374_vm3, %v2373_v19  ;;  %2192 = vmatprep.mubr.msk.bf16.mxu1 (!%p2117_p8), %vm2374_vm3, %v2373_v19  ;;  %s2375_s28 = smov (!%p2117_p8), 8   ;;  %vm673_vm5 = vcmask (!%p2117_p8), 64512   ;;  %s2376_s29 = smov (!%p2117_p8), 108   ;;  %vm720_vm6 = vcmask (!%p2117_p8), 130048  }
  0x27   : > { %612 = vrot.lane.b32.xlu0 (!%p2117_p8), %v609_v13, %s2370_s2  ;;  %v610_v21 = vmul.f32 (!%p2117_p8), %v609_v13, %v2537_v8  ;;  %v658_v28 = vunpack.c.l.bf16 (!%p2117_p8), %v657_v25  ;;  %v767_v30 = vld [vmem:[%s2504_s13] sm:$0xf] (!%p2117_p8)  ;;  %s2377_s21 = smov (!%p2117_p8), 100   ;;  %s2378_s26 = smov (!%p2117_p8), 16   ;;  %vm891_vm7 = vcmask (!%p2117_p8), 130112   ;;  %vm1089_vm8 = vcmask (!%p2117_p8), 195712  }
  0x28   : > { %901 = vrot.lane.b32.xlu1 (!%p2117_p8), %v894_v14, %s2371_s3  ;;  %v2572_v32 = vunpack.c.l.bf16 (!%p2117_p8), %v767_v30  ;;  %v961_v52 = vld [vmem:[%s2504_s13] sm:$0xf] (!%p2117_p8)  ;;  %s2379_s30 = smov (!%p2117_p8), 24   ;;  %s2380_s12 = smov (!%p2117_p8), 120   ;;  %vm1213_vm9 = vcmask (!%p2117_p8), 261312  }
  0x29   : > { %v659_v43 = vmul.f32 (!%p2117_p8), %v658_v28, %v2522_v6  ;;  %v2598_v57 = vunpack.c.l.bf16 (!%p2117_p8), %v961_v52  ;;  %v1091_v59 = vld [vmem:[%s2504_s13] sm:$0xf] (!%p2117_p8)  ;;  %s2381_s15 = smov (!%p2117_p8), 112   ;;  %s2382_s16 = smov (!%p2117_p8), 104  }
  0x2a   : > { %v2609_v61 = vunpack.c.l.bf16 (!%p2117_p8), %v1091_v59 }
  0x2b   : > { %615 = vrot.lane.b32.xlu0 (!%p2117_p8), %v609_v13, %s2372_s0 }
  0x2c   : > { %904 = vrot.lane.b32.xlu1 %v894_v14, %s2370_s2 }
  0x99   : > { %v613_v15 = vpop.permute.xlu0 %612 }
  0x9a   : > { %v902_v17 = vpop.permute.xlu1 %901 }
  0x9d   : > { %v616_v16 = vpop.permute.xlu0 %615 }
  0x9e   : > { %v619_v18 = vsel %vm618_vm2, %v613_v15, %v616_v16  ;;  %v905_v23 = vpop.permute.xlu1 %904 }
  0x9f   : > { %v620_v20 = vmul.f32 %v619_v18, %v2488_v3  ;;  %v907_v27 = vsel %vm618_vm2, %v902_v17, %v905_v23 }
  0xa0   : > { %v908_v29 = vmul.f32 %v907_v27, %v2488_v3 }
  0xa1   : > { %v621_v22 = vmul.f32 %v620_v20, %v2539_v9 }
  0xa2   : > { %v909_v31 = vmul.f32 %v908_v29, %v2539_v9 }
  0xa3   : > { %v622_v24 = vadd.f32 %v621_v22, %v610_v21  ;;  %v624_v22 = vld [vmem:[%s2514_s20] sm:$0xf] }
  0xa4   : > { %v2118_v27 = vcombine.low %v624_v22, %v624_v22 }
  0xa5   : > { %v623_v26 = vpack.c.bf16 %v622_v24, %v622_v24 }
  0xa7   : > { %629 = vrot.lane.b32.xlu1 %v623_v26, %s2372_s0  ;;  %627 = vrot.lane.b32.xlu0 %v623_v26, %s2370_s2  ;;  %v625_v37 = vmul.bf16 %v623_v26, %v2496_v5 }
  0xab   : > { %664 = vrot.lane.b32.xlu1 %v658_v28, %s2372_s0  ;;  %661 = vrot.lane.b32.xlu0 %v658_v28, %s2370_s2 }
  0xaf   : > { %911 = vrot.lane.b32.xlu1 %v909_v31, %s2375_s28  ;;  %896 = vrot.lane.b32.xlu0 %v2537_v8, %s2375_s28 }
  0xb3   : > { %778 = vrot.lane.b32.xlu1 %v2572_v32, %s2370_s2  ;;  %775 = vrot.lane.b32.xlu0 %v2572_v32, %s2371_s3 }
 0x119   : > { %v630_v33 = vpop.permute.xlu1 %629  ;;  %v628_v34 = vpop.permute.xlu0 %627 }
 0x11a   : > { %v633_v35 = vsel %vm618_vm2, %v628_v34, %v630_v33 }
 0x11b   : > { %v635_v36 = vrot.slane %v633_v35, 4 }
 0x11d   : > { %v665_v38 = vpop.permute.xlu1 %664  ;;  %v662_v39 = vpop.permute.xlu0 %661  ;;  %v639_v40 = vsel %vm636_vm4, %v625_v37, %v635_v36 }
 0x11e   : > { %v667_v41 = vsel %vm618_vm2, %v662_v39, %v665_v38  ;;  %v2583_v42 = vsel %vm673_vm5, %v639_v40, 0 }
 0x11f   : > { %v668_v44 = vmul.f32 %v667_v41, %v2488_v3  ;;  %2185 = vmatpush3.bf16.xpose.msra.mxu0 %v2583_v42 }
 0x120   : > { %2202 = vmatprep.subr.bf16.mxu0 %v2373_v19 }
 0x121   : > { %v669_v45 = vmul.f32 %v668_v44, %v2524_v7  ;;  %v897_v46 = vpop.permute.xlu0 %896  ;;  %v912_v47 = vpop.permute.xlu1 %911 }
 0x122   : > { %v899_v48 = vmul.f32 %v897_v46, %v894_v14 }
 0x123   : > { %v670_v49 = vadd.f32 %v669_v45, %v659_v43 }
 0x124   : > { %v914_v50 = vadd.f32 %v912_v47, %v899_v48 }
 0x125   : > { %v671_v51 = vmul.f32 %v670_v49, %v2492_v4  ;;  %v779_v54 = vpop.permute.xlu1 %778  ;;  %v776_v55 = vpop.permute.xlu0 %775 }
 0x126   : > { %v2592_v53 = vpack.c.bf16 %v914_v50, %v914_v50  ;;  %v781_v58 = vsel %vm618_vm2, %v776_v55, %v779_v54 }
 0x127   : > { %v672_v56 = vpack.c.bf16 %v671_v51, %v671_v51  ;;  %v782_v60 = vmul.f32 %v781_v58, %v2488_v3  ;;  %v650_v51 = vmul.bf16 %v624_v22, %v2496_v5 }
 0x128   : > { %925 = vrot.lane.b32.xlu1 %v2592_v53, %s2370_s2  ;;  %923 = vrot.lane.b32.xlu0 %v2592_v53, %s2371_s3 }
 0x129   : > { %2187 = vmatmul.mubr.msk.bf16.vlgmr.msra.gmra.mrb[0].mxu0 %vm673_vm5, %v672_v56  ;;  %v783_v62 = vmul.f32 %v782_v60, %v2524_v7  ;;  %v2119_v56 = vcombine.low %v650_v51, %v650_v51 }
 0x12a   : > { %2204 = vmatprep.mubr.msk.bf16.mxu0 %vm2374_vm3, %v2373_v19 }
 0x12c   : > { %971 = vrot.lane.b32.xlu1 %v2598_v57, %s2371_s3  ;;  %968 = vrot.lane.b32.xlu0 %v2598_v57, %s2376_s29 }
 0x130   : > { %1101 = vrot.lane.b32.xlu1 %v2609_v61, %s2376_s29  ;;  %1098 = vrot.lane.b32.xlu0 %v2609_v61, %s2377_s21 }
 0x134   : > { %785 = vrot.lane.b32.xlu1 %v783_v62, %s2375_s28  ;;  %770 = vrot.lane.b32.xlu0 %v2522_v6, %s2375_s28 }
 0x138   : > { %918 = vrot.lane.b32.xlu1 %v2496_v5, %s2375_s28  ;;  %790 = vrot.lane.b32.xlu0 %v2492_v4, %s2375_s28 }
 0x13c   : > { %963 = vrot.lane.b32.xlu1 %v2522_v6, %s2378_s26 }
 0x140   : > { %982 = vrot.lane.b32.xlu1 %v2492_v4, %s2378_s26 }
 0x19a   : > { %v926_v63 = vpop.permute.xlu1 %925  ;;  %v924_v2 = vpop.permute.xlu0 %923 }
 0x19b   : > { %v929_v10 = vsel %vm618_vm2, %v924_v2, %v926_v63 }
 0x19c   : > { %v931_v11 = vrot.slane %v929_v10, 4 }
 0x19e   : > { %v972_v12 = vpop.permute.xlu1 %971  ;;  %932 = vrot.lane.b32.xlu0 %v931_v11, %s2375_s28  ;;  %v969_v13 = vpop.permute.xlu0 %968 }
 0x19f   : > { %v974_v14 = vsel %vm618_vm2, %v969_v13, %v972_v12 }
 0x1a0   : > { %v975_v15 = vmul.f32 %v974_v14, %v2488_v3 }
 0x1a2   : > { %v976_v16 = vmul.f32 %v975_v15, %v2524_v7  ;;  %v1102_v17 = vpop.permute.xlu1 %1101  ;;  %v1099_v18 = vpop.permute.xlu0 %1098 }
 0x1a3   : > { %v1104_v20 = vsel %vm618_vm2, %v1099_v18, %v1102_v17 }
 0x1a4   : > { %978 = vrot.lane.b32.xlu0 %v976_v16, %s2378_s26  ;;  %v1105_v21 = vmul.f32 %v1104_v20, %v2488_v3  ;;  %v764_v16 = vld [vmem:[#allocation2] sm:$0xff] }
 0x1a6   : > { %v1106_v23 = vmul.f32 %v1105_v21, %v2524_v7  ;;  %v771_v24 = vpop.permute.xlu0 %770  ;;  %v786_v26 = vpop.permute.xlu1 %785 }
 0x1a7   : > { %v773_v25 = vmul.f32 %v771_v24, %v2572_v32 }
 0x1a8   : > { %1093 = vrot.lane.b32.xlu0 %v2522_v6, %s2379_s30  ;;  %1108 = vrot.lane.b32.xlu1 %v1106_v23, %s2379_s30 }
 0x1a9   : > { %v788_v28 = vadd.f32 %v786_v26, %v773_v25 }
 0x1aa   : > { %v791_v29 = vpop.permute.xlu0 %790  ;;  %v919_v36 = vpop.permute.xlu1 %918 }
 0x1ab   : > { %v793_v30 = vmul.f32 %v791_v29, %v788_v28  ;;  %v921_v37 = vmul.bf16 %v919_v36, %v2592_v53 }
 0x1ac   : > { %1112 = vrot.lane.b32.xlu0 %v2492_v4, %s2379_s30  ;;  %643 = vrot.lane.b32.xlu1 %v2118_v27, %s2370_s2 }
 0x1ad   : > { %v794_v31 = vpack.c.bf16 %v793_v30, %v793_v30 }
 0x1ae   : > { %v964_v39 = vpop.permute.xlu1 %963 }
 0x1af   : > { %v966_v41 = vmul.f32 %v964_v39, %v2598_v57  ;;  %v916_v57 = vld [vmem:[%s2514_s20] sm:$0xf] }
 0x1b0   : > { %645 = vrot.lane.b32.xlu0 %v2118_v27, %s2372_s0  ;;  %796 = vrot.lane.b32.xlu1 %v794_v31, %s2380_s12 }
 0x1b2   : > { %v983_v44 = vpop.permute.xlu1 %982 }
 0x1fc   : > { %v713_v32 = vpop.f32.mrb[0].mxu0 }
 0x1fd   : > { %v2188_v33 = vpop.f32.mrb[1].mxu0  ;;  %v719_v63 = vpack.c.bf16 %v713_v32, %v713_v32 }
 0x1fe   : > { %v716_v34 = vpop.f32.mrb[2].mxu0 }
 0x1ff   : > { %v2189_v35 = vpop.f32.mrb[3].mxu0 }
 0x210   : > { %v933_v38 = vpop.permute.xlu0 %932 }
 0x211   : > { %v936_v40 = vsel %vm636_vm4, %v921_v37, %v933_v38 }
 0x212   : > { %991 = vrot.lane.b32.xlu0 %v936_v40, %s2380_s12 }
 0x216   : > { %v979_v43 = vpop.permute.xlu0 %978 }
 0x217   : > { %v981_v45 = vadd.f32 %v979_v43, %v966_v41 }
 0x219   : > { %v985_v46 = vmul.f32 %v983_v44, %v981_v45 }
 0x21a   : > { %v1094_v47 = vpop.permute.xlu0 %1093  ;;  %v1109_v48 = vpop.permute.xlu1 %1108 }
 0x21b   : > { %v986_v49 = vpack.c.bf16 %v985_v46, %v985_v46  ;;  %v1096_v50 = vmul.f32 %v1094_v47, %v2609_v61  ;;  %v2124_v61 = vcombine.low %v916_v57, %v916_v57 }
 0x21d   : > { %988 = vrot.lane.b32.xlu1 %v986_v49, %s2381_s15  ;;  %v1111_v52 = vadd.f32 %v1109_v48, %v1096_v50 }
 0x21e   : > { %v1113_v53 = vpop.permute.xlu0 %1112  ;;  %v644_v55 = vpop.permute.xlu1 %643 }
 0x21f   : > { %v1115_v54 = vmul.f32 %v1113_v53, %v1111_v52 }
 0x221   : > { %v1116_v58 = vpack.c.bf16 %v1115_v54, %v1115_v54  ;;  %949 = vrot.lane.b32.xlu1 %v2496_v5, %s2375_s28 }
 0x222   : > { %v646_v59 = vpop.permute.xlu0 %645  ;;  %v797_v2 = vpop.permute.xlu1 %796 }
 0x223   : > { %v649_v60 = vsel %vm618_vm2, %v644_v55, %v646_v59  ;;  %1118 = vrot.lane.b32.xlu0 %v1116_v58, %s2382_s16 }
 0x224   : > { %v655_v62 = vsel %vm636_vm4, %v649_v60, %v2119_v56 }
 0x225   : > { %2191 = vmatpush3.bf16.msra.mxu1 %v655_v62  ;;  %2203 = vmatpush3.bf16.msra.mxu0 %v655_v62 }
 0x226   : > { %2196 = vmatprep.subr.bf16.mxu1 %v2373_v19  ;;  %942 = vrot.lane.b32.xlu1 %v2124_v61, %s2370_s2 }
 0x227   : > { %940 = vrot.lane.b32.xlu0 %v2124_v61, %s2371_s3  ;;  %2214 = vmatprep.subr.bf16.mxu0 %v2373_v19 }
 0x228   : > { %2193 = vmatmul.mubr.msk.bf16.vlgmr.msra.gmra.mrb[0].mxu1 %vm720_vm6, %v719_v63 }
 0x229   : > { %2198 = vmatprep.mubr.msk.bf16.mxu1 %vm2374_vm3, %v2373_v19 }
 0x22e   : > { %2197 = vmatpush3.bf16.xpose.msra.mxu1 %v2583_v42 }
 0x22f   : > { %2208 = vmatprep.subr.bf16.mxu1 %v2373_v19 }
 0x235   : > { %2199 = vmatmul.mubr.msk.bf16.vlgmr.msra.gmra.mrb[4].mxu1 %vm673_vm5, %v797_v2 }
 0x236   : > { %2210 = vmatprep.mubr.msk.bf16.mxu1 %vm2374_vm3, %v2373_v19 }
 0x284   : > { %v992_v10 = vpop.permute.xlu0 %991 }
 0x285   : > { %v997_v11 = vsel %vm673_vm5, %v992_v10, 0 }
 0x286   : > { %2209 = vmatpush3.bf16.xpose.msra.mxu1 %v997_v11 }
 0x287   : > { %2220 = vmatprep.subr.bf16.mxu1 %v2373_v19 }
 0x28f   : > { %v989_v12 = vpop.permute.xlu1 %988 }
 0x290   : > { %2211 = vmatmul.mubr.msk.bf16.vlgmr.msra.gmra.mrb[8].mxu1 %vm673_vm5, %v989_v12 }
 0x291   : > { %2221 = vmatpush3.bf16.xpose.msra.mxu1 %v997_v11  ;;  %2222 = vmatprep.mubr.msk.bf16.mxu1 %vm2374_vm3, %v2373_v19 }
 0x293   : > { %v950_v42 = vpop.permute.xlu1 %949 }
 0x294   : > { %v952_v13 = vmul.bf16 %v950_v42, %v916_v57 }
 0x295   : > { %v1119_v14 = vpop.permute.xlu0 %1118 }
 0x296   : > { %v2126_v15 = vcombine.low %v952_v13, %v952_v13 }
 0x298   : > { %2223 = vmatmul.mubr.msk.bf16.vlgmr.msra.gmra.mrb[12].mxu1 %vm673_vm5, %v1119_v14  ;;  %956 = vrot.lane.b32.xlu0 %v2126_v15, %s2380_s12  ;;  %v943_v24 = vpop.permute.xlu1 %942 }
 0x299   : > { %v941_v23 = vpop.permute.xlu0 %940 }
 0x29a   : > { %v946_v26 = vsel %vm618_vm2, %v941_v23, %v943_v24 }
 0x2fb   : > { %v758_v17 = vpop.f32.mrb[0].mxu1 }
 0x2fc   : > { %v765_v18 = vadd.f32 %v764_v16, %v758_v17  ;;  %v2194_v20 = vpop.f32.mrb[1].mxu1 }
 0x2fd   : > { %v761_v21 = vpop.f32.mrb[2].mxu1 }
 0x2fe   : > { %766 = vst.msk [vmem:[#allocation2] sm:$0xff] %vm673_vm5, %v765_v18  ;;  %v2195_v22 = vpop.f32.mrb[3].mxu1 }
 0x305   : > { %v885_v55 = vld [vmem:[#allocation2] sm:$0xff] }
 0x308   : > { %v835_v25 = vpop.f32.mrb[4].mxu1 }
 0x309   : > { %v841_v27 = vpack.c.bf16 %v835_v25, %v835_v25  ;;  %v2200_v28 = vpop.f32.mrb[5].mxu1 }
 0x30a   : > { %v838_v29 = vpop.f32.mrb[6].mxu1  ;;  %v957_v30 = vpop.permute.xlu0 %956 }
 0x30b   : > { %2205 = vmatmul.mubr.msk.bf16.vlgmr.msra.gmra.mrb[4].mxu0 %vm720_vm6, %v841_v27  ;;  %v959_v31 = vsel %vm636_vm4, %v946_v26, %v957_v30  ;;  %v2201_v32 = vpop.f32.mrb[7].mxu1 }
 0x30c   : > { %2215 = vmatpush3.bf16.msra.mxu0 %v959_v31  ;;  %2216 = vmatprep.mubr.msk.bf16.mxu0 %vm2374_vm3, %v2373_v19 }
 0x30d   : > { %2226 = vmatprep.subr.bf16.mxu0 %v2373_v19 }
 0x363   : > { %v1033_v33 = vpop.f32.mrb[8].mxu1 }
 0x364   : > { %v1039_v34 = vpack.c.bf16 %v1033_v33, %v1033_v33  ;;  %v2212_v35 = vpop.f32.mrb[9].mxu1 }
 0x365   : > { %v1036_v36 = vpop.f32.mrb[10].mxu1 }
 0x366   : > { %v2213_v37 = vpop.f32.mrb[11].mxu1  ;;  %2217 = vmatmul.mubr.msk.bf16.vlgmr.msra.gmra.mrb[8].mxu0 %vm720_vm6, %v1039_v34 }
 0x367   : > { %2227 = vmatpush3.bf16.msra.mxu0 %v959_v31  ;;  %2228 = vmatprep.mubr.msk.bf16.mxu0 %vm2374_vm3, %v2373_v19 }
 0x36b   : > { %v1157_v38 = vpop.f32.mrb[12].mxu1 }
 0x36c   : > { %v1163_v39 = vpack.c.bf16 %v1157_v38, %v1157_v38  ;;  %v2224_v40 = vpop.f32.mrb[13].mxu1 }
 0x36d   : > { %v1160_v41 = vpop.f32.mrb[14].mxu1 }
 0x36e   : > { %v2225_v43 = vpop.f32.mrb[15].mxu1  ;;  %2229 = vmatmul.mubr.msk.bf16.vlgmr.msra.gmra.mrb[12].mxu0 %vm720_vm6, %v1163_v39 }
 0x3de   : > { %v879_v44 = vpop.f32.mrb[4].mxu0 }
 0x3df   : > { %887 = vrot.lane.b32.xlu1 %v879_v44, %s2375_s28  ;;  %v2206_v45 = vpop.f32.mrb[5].mxu0 }
 0x3e0   : > { %v882_v46 = vpop.f32.mrb[6].mxu0 }
 0x3e1   : > { %v2207_v47 = vpop.f32.mrb[7].mxu0 }
 0x439   : > { %v1077_v48 = vpop.f32.mrb[8].mxu0 }
 0x43a   : > { %1085 = vrot.lane.b32.xlu0 %v1077_v48, %s2378_s26  ;;  %v2218_v49 = vpop.f32.mrb[9].mxu0 }
 0x43b   : > { %v1080_v50 = vpop.f32.mrb[10].mxu0 }
 0x43c   : > { %v2219_v51 = vpop.f32.mrb[11].mxu0 }
 0x441   : > { %v1201_v19 = vpop.f32.mrb[12].mxu0 }
 0x442   : > { %v2230_v52 = vpop.f32.mrb[13].mxu0  ;;  %1209 = vrot.lane.b32.xlu1 %v1201_v19, %s2379_s30 }
 0x443   : > { %v1204_v53 = vpop.f32.mrb[14].mxu0 }
 0x444   : > { %v2231_v54 = vpop.f32.mrb[15].mxu0 }
 0x451   : > { %v888_v56 = vpop.permute.xlu1 %887 }
 0x452   : > { %v890_v57 = vadd.f32 %v888_v56, %v885_v55 }
 0x454   : > { %892 = vst.msk [vmem:[#allocation2] sm:$0xff] %vm891_vm7, %v890_v57 }
 0x45b   : > { %v1083_v58 = vld [vmem:[#allocation2] sm:$0xff] }
 0x4ac   : > { %v1086_v59 = vpop.permute.xlu0 %1085 }
 0x4ad   : > { %v1088_v60 = vadd.f32 %v1086_v59, %v1083_v58 }
 0x4af   : > { %1090 = vst.msk [vmem:[#allocation2] sm:$0xff] %vm1089_vm8, %v1088_v60 }
 0x4b4   : > { %v1210_v61 = vpop.permute.xlu1 %1209 }
 0x4b6   : > { %v1207_v62 = vld [vmem:[#allocation2] sm:$0xff] }
 0x4b7   : > { %v1212_v63 = vadd.f32 %v1210_v61, %v1207_v62 }
 0x4b9   : > { %1214 = vst.msk [vmem:[#allocation2] sm:$0xff] %vm1213_vm9, %v1212_v63 }
 0x4ba PF: > { %p2131_p9 = scmp.ne.s32.totalorder %s2482_s24, %s2480_s1 }
 0x4bb   : > { %v1225_v2 = vld [vmem:[%s2509_s17] sm:$0xf] (!%p2131_p9)  ;;  %s2383_s18 = smov (!%p2131_p9), 124   ;;  %s2384_s14 = smov (!%p2131_p9), 116   ;;  %vm1235_vm10 = vcmask (!%p2131_p9), 31744   ;;  %v2386_v16 = vmov (!%p2131_p9), 0.0  }
 0x4bc   : > { %1218 = sbr.rel (%p2131_p9) target bundleno = 2944 (0xb80), region = 68  ;;  %v1512_v10 = vld [vmem:[%s2509_s17] sm:$0xf] (!%p2131_p9)  ;;  %v1226_v11 = vunpack.c.l.bf16 (!%p2131_p9), %v1225_v2  ;;  %s2385_s19 = smov (!%p2131_p9), 4   ;;  %2232 = vmatprep.subr.bf16.mxu0 (!%p2131_p9), %v2386_v16  ;;  %2238 = vmatprep.subr.bf16.mxu1 (!%p2131_p9), %v2386_v16  ;;  %vm2387_vm11 = vmmov (!%p2131_p9), 0   ;;  %vm1253_vm12 = vcmask (!%p2131_p9), 1043456  }
 0x4bd   : > { %v1513_v12 = vunpack.c.l.bf16 (!%p2131_p9), %v1512_v10  ;;  %v1274_v23 = vld [vmem:[%s2504_s13] sm:$0xf] (!%p2131_p9)  ;;  %2234 = vmatprep.mubr.msk.bf16.mxu0 (!%p2131_p9), %vm2387_vm11, %v2386_v16  ;;  %2240 = vmatprep.mubr.msk.bf16.mxu1 (!%p2131_p9), %vm2387_vm11, %v2386_v16  ;;  %s2388_s1 = smov (!%p2131_p9), 8   ;;  %vm1290_vm13 = vcmask (!%p2131_p9), 64512   ;;  %s2389_s24 = smov (!%p2131_p9), 108   ;;  %vm1221_vm14 = vcmp.lt.s32.totalorder (!%p2131_p9), %v2485_v1, 8 }
 0x4be   : > { %1229 = vrot.lane.b32.xlu0 (!%p2131_p9), %v1226_v11, %s2383_s18  ;;  %v1227_v18 = vmul.f32 (!%p2131_p9), %v1226_v11, %v2537_v8  ;;  %v1275_v26 = vunpack.c.l.bf16 (!%p2131_p9), %v1274_v23  ;;  %v1385_v28 = vld [vmem:[%s2504_s13] sm:$0xf] (!%p2131_p9)  ;;  %s2390_s17 = smov (!%p2131_p9), 100   ;;  %s2392_s27 = smov (!%p2131_p9), 24   ;;  %vm1338_vm0 = vcmask (!%p2131_p9), 130048   ;;  %vm1510_vm1 = vcmask (!%p2131_p9), 130112  }
 0x4bf   : > { %1520 = vrot.lane.b32.xlu1 (!%p2131_p9), %v1513_v12, %s2384_s14  ;;  %v2718_v30 = vunpack.c.l.bf16 (!%p2131_p9), %v1385_v28  ;;  %v1580_v49 = vld [vmem:[%s2504_s13] sm:$0xf] (!%p2131_p9)  ;;  %s2393_s22 = smov (!%p2131_p9), 120   ;;  %s2394_s2 = smov (!%p2131_p9), 112   ;;  %vm1709_vm2 = vcmask (!%p2131_p9), 195712   ;;  %vm1834_vm3 = vcmask (!%p2131_p9), 261312  }
 0x4c0   : > { %v1276_v39 = vmul.f32 (!%p2131_p9), %v1275_v26, %v2522_v6  ;;  %v2744_v53 = vunpack.c.l.bf16 (!%p2131_p9), %v1580_v49  ;;  %v1711_v55 = vld [vmem:[%s2504_s13] sm:$0xf] (!%p2131_p9)  ;;  %s2391_s13 = smov (!%p2131_p9), 16   ;;  %s2395_s3 = smov (!%p2131_p9), 104   ;;  %vm1914_vm4 = vcmask (!%p2131_p9), 195584   ;;  %vm1933_vm5 = vcmask (!%p2131_p9), 257024  }
 0x4c1   : > { %v2755_v57 = vunpack.c.l.bf16 (!%p2131_p9), %v1711_v55 }
 0x4c2   : > { %1232 = vrot.lane.b32.xlu0 (!%p2131_p9), %v1226_v11, %s2385_s19 }
 0x4c3   : > { %1523 = vrot.lane.b32.xlu1 %v1513_v12, %s2383_s18 }
 0x530   : > { %v1230_v42 = vpop.permute.xlu0 %1229 }
 0x531   : > { %v1521_v14 = vpop.permute.xlu1 %1520 }
 0x534   : > { %v1233_v13 = vpop.permute.xlu0 %1232 }
 0x535   : > { %v1236_v15 = vsel %vm1235_vm10, %v1230_v42, %v1233_v13  ;;  %v1524_v21 = vpop.permute.xlu1 %1523 }
 0x536   : > { %v1237_v17 = vmul.f32 %v1236_v15, %v2488_v3  ;;  %v1526_v25 = vsel %vm1235_vm10, %v1521_v14, %v1524_v21 }
 0x537   : > { %v1527_v27 = vmul.f32 %v1526_v25, %v2488_v3 }
 0x538   : > { %v1238_v20 = vmul.f32 %v1237_v17, %v2539_v9  ;;  %v1241_v17 = vld [vmem:[%s2514_s20] sm:$0xf] }
 0x539   : > { %v1528_v29 = vmul.f32 %v1527_v27, %v2539_v9  ;;  %v2133_v23 = vcombine.low %v1241_v17, %v1241_v17 }
 0x53a   : > { %v1239_v22 = vadd.f32 %v1238_v20, %v1227_v18 }
 0x53c   : > { %v1240_v24 = vpack.c.bf16 %v1239_v22, %v1239_v22 }
 0x53e   : > { %1246 = vrot.lane.b32.xlu1 %v1240_v24, %s2385_s19  ;;  %1244 = vrot.lane.b32.xlu0 %v1240_v24, %s2383_s18  ;;  %v1242_v34 = vmul.bf16 %v1240_v24, %v2496_v5 }
 0x542   : > { %1281 = vrot.lane.b32.xlu1 %v1275_v26, %s2385_s19  ;;  %1278 = vrot.lane.b32.xlu0 %v1275_v26, %s2383_s18 }
 0x546   : > { %1530 = vrot.lane.b32.xlu1 %v1528_v29, %s2388_s1  ;;  %1515 = vrot.lane.b32.xlu0 %v2537_v8, %s2388_s1 }
 0x54a   : > { %1396 = vrot.lane.b32.xlu1 %v2718_v30, %s2383_s18  ;;  %1393 = vrot.lane.b32.xlu0 %v2718_v30, %s2384_s14 }
 0x5b0   : > { %v1247_v31 = vpop.permute.xlu1 %1246  ;;  %v1245_v32 = vpop.permute.xlu0 %1244 }
 0x5b1   : > { %v1250_v33 = vsel %vm1235_vm10, %v1245_v32, %v1247_v31 }
 0x5b2   : > { %v1252_v9 = vrot.slane %v1250_v33, 4 }
 0x5b4   : > { %v1282_v35 = vpop.permute.xlu1 %1281  ;;  %v1279_v8 = vpop.permute.xlu0 %1278  ;;  %v1256_v36 = vsel %vm1253_vm12, %v1242_v34, %v1252_v9 }
 0x5b5   : > { %v1284_v37 = vsel %vm1235_vm10, %v1279_v8, %v1282_v35  ;;  %v2729_v38 = vsel %vm1290_vm13, %v1256_v36, 0  ;;  %v2132_v8 = vadd.s32 4294967288, %v2485_v1 }
 0x5b6   : > { %v1285_v40 = vmul.f32 %v1284_v37, %v2488_v3  ;;  %2233 = vmatpush3.bf16.xpose.msra.mxu0 %v2729_v38 }
 0x5b7   : > { %2250 = vmatprep.subr.bf16.mxu0 %v2386_v16 }
 0x5b8   : > { %v1286_v41 = vmul.f32 %v1285_v40, %v2524_v7  ;;  %v1516_v43 = vpop.permute.xlu0 %1515  ;;  %v1531_v44 = vpop.permute.xlu1 %1530 }
 0x5b9   : > { %v1518_v45 = vmul.f32 %v1516_v43, %v1513_v12  ;;  %v2798_v43 = vshrl.u32 %v588_v0, 7 }
 0x5ba   : > { %v1287_v46 = vadd.f32 %v1286_v41, %v1276_v39 }
 0x5bb   : > { %v1533_v47 = vadd.f32 %v1531_v44, %v1518_v45  ;;  %v1267_v44 = vmul.bf16 %v1241_v17, %v2496_v5  ;;  %v2802_v45 = vsel %vm1221_vm14, %v2485_v1, %v2132_v8 }
 0x5bc   : > { %v1288_v48 = vmul.f32 %v1287_v46, %v2492_v4  ;;  %v1397_v51 = vpop.permute.xlu1 %1396  ;;  %v1394_v19 = vpop.permute.xlu0 %1393  ;;  %vm1224_vm15 = vcmp.le.s32.totalorder %v2802_v45, %v2798_v43 }
 0x5bd   : > { %v2738_v50 = vpack.c.bf16 %v1533_v47, %v1533_v47  ;;  %v1399_v54 = vsel %vm1235_vm10, %v1394_v19, %v1397_v51  ;;  %v1535_v51 = vld [vmem:[%s2514_s20] sm:$0xf] }
 0x5be   : > { %v1289_v52 = vpack.c.bf16 %v1288_v48, %v1288_v48  ;;  %v1400_v56 = vmul.f32 %v1399_v54, %v2488_v3 }
 0x5bf   : > { %1544 = vrot.lane.b32.xlu1 %v2738_v50, %s2383_s18  ;;  %1542 = vrot.lane.b32.xlu0 %v2738_v50, %s2384_s14 }
 0x5c0   : > { %2235 = vmatmul.mubr.msk.bf16.vlgmr.msra.gmra.mrb[0].mxu0 %vm1290_vm13, %v1289_v52  ;;  %v1401_v58 = vmul.f32 %v1400_v56, %v2524_v7 }
 0x5c1   : > { %2252 = vmatprep.mubr.msk.bf16.mxu0 %vm2387_vm11, %v2386_v16 }
 0x5c3   : > { %1590 = vrot.lane.b32.xlu1 %v2744_v53, %s2384_s14  ;;  %1587 = vrot.lane.b32.xlu0 %v2744_v53, %s2389_s24 }
 0x5c7   : > { %1721 = vrot.lane.b32.xlu1 %v2755_v57, %s2389_s24  ;;  %1718 = vrot.lane.b32.xlu0 %v2755_v57, %s2390_s17 }
 0x5cb   : > { %1403 = vrot.lane.b32.xlu1 %v1401_v58, %s2388_s1  ;;  %1388 = vrot.lane.b32.xlu0 %v2522_v6, %s2388_s1 }
 0x5cf   : > { %1537 = vrot.lane.b32.xlu1 %v2496_v5, %s2388_s1  ;;  %1408 = vrot.lane.b32.xlu0 %v2492_v4, %s2388_s1 }
 0x5d3   : > { %1582 = vrot.lane.b32.xlu1 %v2522_v6, %s2391_s13 }
 0x5d7   : > { %1601 = vrot.lane.b32.xlu1 %v2492_v4, %s2391_s13 }
 0x631   : > { %v1545_v59 = vpop.permute.xlu1 %1544  ;;  %v1543_v60 = vpop.permute.xlu0 %1542 }
 0x632   : > { %v1548_v61 = vsel %vm1235_vm10, %v1543_v60, %v1545_v59 }
 0x633   : > { %v1550_v62 = vrot.slane %v1548_v61, 4 }
 0x635   : > { %v1591_v63 = vpop.permute.xlu1 %1590  ;;  %1551 = vrot.lane.b32.xlu0 %v1550_v62, %s2388_s1  ;;  %v1588_v2 = vpop.permute.xlu0 %1587  ;;  %v1382_v62 = vld [vmem:[#allocation2] sm:$0xff] }
 0x636   : > { %v1593_v10 = vsel %vm1235_vm10, %v1588_v2, %v1591_v63 }
 0x637   : > { %v1594_v11 = vmul.f32 %v1593_v10, %v2488_v3 }
 0x639   : > { %v1595_v12 = vmul.f32 %v1594_v11, %v2524_v7  ;;  %v1722_v42 = vpop.permute.xlu1 %1721  ;;  %v1719_v13 = vpop.permute.xlu0 %1718 }
 0x63a   : > { %v1724_v14 = vsel %vm1235_vm10, %v1719_v13, %v1722_v42 }
 0x63b   : > { %1597 = vrot.lane.b32.xlu0 %v1595_v12, %s2391_s13  ;;  %v1725_v15 = vmul.f32 %v1724_v14, %v2488_v3 }
 0x63d   : > { %v1726_v18 = vmul.f32 %v1725_v15, %v2524_v7  ;;  %v1389_v20 = vpop.permute.xlu0 %1388  ;;  %v1404_v22 = vpop.permute.xlu1 %1403 }
 0x63e   : > { %v1391_v21 = vmul.f32 %v1389_v20, %v2718_v30 }
 0x63f   : > { %1713 = vrot.lane.b32.xlu0 %v2522_v6, %s2392_s27  ;;  %1728 = vrot.lane.b32.xlu1 %v1726_v18, %s2392_s27 }
 0x640   : > { %v1406_v24 = vadd.f32 %v1404_v22, %v1391_v21 }
 0x641   : > { %v1409_v25 = vpop.permute.xlu0 %1408  ;;  %v1538_v29 = vpop.permute.xlu1 %1537 }
 0x642   : > { %v1411_v26 = vmul.f32 %v1409_v25, %v1406_v24  ;;  %v1540_v30 = vmul.bf16 %v1538_v29, %v2738_v50  ;;  %v2134_v50 = vcombine.low %v1267_v44, %v1267_v44 }
 0x643   : > { %1732 = vrot.lane.b32.xlu0 %v2492_v4, %s2392_s27  ;;  %1260 = vrot.lane.b32.xlu1 %v2133_v23, %s2383_s18 }
 0x644   : > { %v1412_v3 = vpack.c.bf16 %v1411_v26, %v1411_v26 }
 0x645   : > { %v1583_v32 = vpop.permute.xlu1 %1582 }
 0x646   : > { %v1585_v4 = vmul.f32 %v1583_v32, %v2744_v53  ;;  %v2139_v53 = vcombine.low %v1535_v51, %v1535_v51 }
 0x647   : > { %1262 = vrot.lane.b32.xlu0 %v2133_v23, %s2385_s19  ;;  %1414 = vrot.lane.b32.xlu1 %v1412_v3, %s2393_s22 }
 0x649   : > { %v1602_v34 = vpop.permute.xlu1 %1601 }
 0x693   : > { %v1330_v7 = vpop.f32.mrb[0].mxu0 }
 0x694   : > { %v2236_v27 = vpop.f32.mrb[1].mxu0  ;;  %v1336_v1 = vsel %vm1224_vm15, %v1330_v7, 0.0 }
 0x695   : > { %v1333_v6 = vpop.f32.mrb[2].mxu0  ;;  %v1337_v55 = vpack.c.bf16 %v1336_v1, %v1336_v1 }
 0x696   : > { %v2237_v28 = vpop.f32.mrb[3].mxu0 }
 0x6a7   : > { %v1552_v31 = vpop.permute.xlu0 %1551 }
 0x6a8   : > { %v1555_v33 = vsel %vm1253_vm12, %v1540_v30, %v1552_v31 }
 0x6a9   : > { %1610 = vrot.lane.b32.xlu0 %v1555_v33, %s2393_s22 }
 0x6ad   : > { %v1598_v9 = vpop.permute.xlu0 %1597 }
 0x6ae   : > { %v1600_v35 = vadd.f32 %v1598_v9, %v1585_v4 }
 0x6b0   : > { %v1604_v36 = vmul.f32 %v1602_v34, %v1600_v35 }
 0x6b1   : > { %v1714_v37 = vpop.permute.xlu0 %1713  ;;  %v1729_v39 = vpop.permute.xlu1 %1728 }
 0x6b2   : > { %v1605_v40 = vpack.c.bf16 %v1604_v36, %v1604_v36  ;;  %v1716_v41 = vmul.f32 %v1714_v37, %v2755_v57 }
 0x6b4   : > { %1607 = vrot.lane.b32.xlu1 %v1605_v40, %s2394_s2  ;;  %v1731_v46 = vadd.f32 %v1729_v39, %v1716_v41 }
 0x6b5   : > { %v1733_v47 = vpop.permute.xlu0 %1732  ;;  %v1261_v49 = vpop.permute.xlu1 %1260 }
 0x6b6   : > { %v1735_v48 = vmul.f32 %v1733_v47, %v1731_v46 }
 0x6b8   : > { %v1736_v19 = vpack.c.bf16 %v1735_v48, %v1735_v48  ;;  %1568 = vrot.lane.b32.xlu1 %v2496_v5, %s2388_s1 }
 0x6b9   : > { %v1263_v0 = vpop.permute.xlu0 %1262  ;;  %v1415_v5 = vpop.permute.xlu1 %1414 }
 0x6ba   : > { %v1266_v52 = vsel %vm1235_vm10, %v1261_v49, %v1263_v0  ;;  %1738 = vrot.lane.b32.xlu0 %v1736_v19, %s2395_s3 }
 0x6bb   : > { %v1272_v54 = vsel %vm1253_vm12, %v1266_v52, %v2134_v50 }
 0x6bc   : > { %2239 = vmatpush3.bf16.msra.mxu1 %v1272_v54  ;;  %2251 = vmatpush3.bf16.msra.mxu0 %v1272_v54 }
 0x6bd   : > { %2244 = vmatprep.subr.bf16.mxu1 %v2386_v16  ;;  %1561 = vrot.lane.b32.xlu1 %v2139_v53, %s2383_s18 }
 0x6be   : > { %1559 = vrot.lane.b32.xlu0 %v2139_v53, %s2384_s14  ;;  %2262 = vmatprep.subr.bf16.mxu0 %v2386_v16 }
 0x6bf   : > { %2241 = vmatmul.mubr.msk.bf16.vlgmr.msra.gmra.mrb[0].mxu1 %vm1338_vm0, %v1337_v55 }
 0x6c0   : > { %2246 = vmatprep.mubr.msk.bf16.mxu1 %vm2387_vm11, %v2386_v16 }
 0x6c5   : > { %2245 = vmatpush3.bf16.xpose.msra.mxu1 %v2729_v38 }
 0x6c6   : > { %2256 = vmatprep.subr.bf16.mxu1 %v2386_v16 }
 0x6cc   : > { %2247 = vmatmul.mubr.msk.bf16.vlgmr.msra.gmra.mrb[4].mxu1 %vm1290_vm13, %v1415_v5 }
 0x6cd   : > { %2258 = vmatprep.mubr.msk.bf16.mxu1 %vm2387_vm11, %v2386_v16 }
 0x71b   : > { %v1611_v56 = vpop.permute.xlu0 %1610 }
 0x71c   : > { %v1616_v57 = vsel %vm1290_vm13, %v1611_v56, 0 }
 0x71d   : > { %2257 = vmatpush3.bf16.xpose.msra.mxu1 %v1616_v57 }
 0x71e   : > { %2268 = vmatprep.subr.bf16.mxu1 %v2386_v16 }
 0x726   : > { %v1608_v58 = vpop.permute.xlu1 %1607 }
 0x727   : > { %2259 = vmatmul.mubr.msk.bf16.vlgmr.msra.gmra.mrb[8].mxu1 %vm1290_vm13, %v1608_v58 }
 0x728   : > { %2269 = vmatpush3.bf16.xpose.msra.mxu1 %v1616_v57  ;;  %2270 = vmatprep.mubr.msk.bf16.mxu1 %vm2387_vm11, %v2386_v16 }
 0x72a   : > { %v1569_v38 = vpop.permute.xlu1 %1568 }
 0x72b   : > { %v1571_v59 = vmul.bf16 %v1569_v38, %v1535_v51 }
 0x72c   : > { %v1739_v60 = vpop.permute.xlu0 %1738 }
 0x72d   : > { %v2141_v61 = vcombine.low %v1571_v59, %v1571_v59 }
 0x72f   : > { %2271 = vmatmul.mubr.msk.bf16.vlgmr.msra.gmra.mrb[12].mxu1 %vm1290_vm13, %v1739_v60  ;;  %1575 = vrot.lane.b32.xlu0 %v2141_v61, %s2393_s22  ;;  %v1562_v13 = vpop.permute.xlu1 %1561 }
 0x730   : > { %v1560_v42 = vpop.permute.xlu0 %1559 }
 0x731   : > { %v1565_v15 = vsel %vm1235_vm10, %v1560_v42, %v1562_v13 }
 0x792   : > { %v1376_v63 = vpop.f32.mrb[0].mxu1 }
 0x793   : > { %v1383_v2 = vadd.f32 %v1382_v62, %v1376_v63  ;;  %v2242_v10 = vpop.f32.mrb[1].mxu1 }
 0x794   : > { %v1379_v11 = vpop.f32.mrb[2].mxu1 }
 0x795   : > { %1384 = vst.msk [vmem:[#allocation2] sm:$0xff] %vm1290_vm13, %v1383_v2  ;;  %v2243_v12 = vpop.f32.mrb[3].mxu1 }
 0x79c   : > { %v1504_v44 = vld [vmem:[#allocation2] sm:$0xff] }
 0x79f   : > { %v1453_v14 = vpop.f32.mrb[4].mxu1 }
 0x7a0   : > { %v1459_v17 = vsel %vm1224_vm15, %v1453_v14, 0.0  ;;  %v2248_v18 = vpop.f32.mrb[5].mxu1 }
 0x7a1   : > { %v1460_v20 = vpack.c.bf16 %v1459_v17, %v1459_v17  ;;  %v1456_v21 = vpop.f32.mrb[6].mxu1  ;;  %v1576_v22 = vpop.permute.xlu0 %1575 }
 0x7a2   : > { %v2249_v23 = vpop.f32.mrb[7].mxu1  ;;  %v1578_v24 = vsel %vm1253_vm12, %v1565_v15, %v1576_v22 }
 0x7a3   : > { %2253 = vmatmul.mubr.msk.bf16.vlgmr.msra.gmra.mrb[4].mxu0 %vm1338_vm0, %v1460_v20 }
 0x7a4   : > { %2263 = vmatpush3.bf16.msra.mxu0 %v1578_v24  ;;  %2264 = vmatprep.mubr.msk.bf16.mxu0 %vm2387_vm11, %v2386_v16 }
 0x7a5   : > { %2274 = vmatprep.subr.bf16.mxu0 %v2386_v16 }
 0x7fa   : > { %v1652_v25 = vpop.f32.mrb[8].mxu1 }
 0x7fb   : > { %v1658_v26 = vsel %vm1224_vm15, %v1652_v25, 0.0  ;;  %v2260_v3 = vpop.f32.mrb[9].mxu1 }
 0x7fc   : > { %v1659_v7 = vpack.c.bf16 %v1658_v26, %v1658_v26  ;;  %v1655_v27 = vpop.f32.mrb[10].mxu1 }
 0x7fd   : > { %v2261_v6 = vpop.f32.mrb[11].mxu1 }
 0x7fe   : > { %2265 = vmatmul.mubr.msk.bf16.vlgmr.msra.gmra.mrb[8].mxu0 %vm1338_vm0, %v1659_v7 }
 0x7ff   : > { %2275 = vmatpush3.bf16.msra.mxu0 %v1578_v24  ;;  %2276 = vmatprep.mubr.msk.bf16.mxu0 %vm2387_vm11, %v2386_v16 }
 0x802   : > { %v1777_v28 = vpop.f32.mrb[12].mxu1 }
 0x803   : > { %v1783_v29 = vsel %vm1224_vm15, %v1777_v28, 0.0  ;;  %v2272_v30 = vpop.f32.mrb[13].mxu1 }
 0x804   : > { %v1784_v31 = vpack.c.bf16 %v1783_v29, %v1783_v29  ;;  %v1780_v32 = vpop.f32.mrb[14].mxu1 }
 0x805   : > { %v2273_v33 = vpop.f32.mrb[15].mxu1 }
 0x806   : > { %2277 = vmatmul.mubr.msk.bf16.vlgmr.msra.gmra.mrb[12].mxu0 %vm1338_vm0, %v1784_v31 }
 0x876   : > { %v1498_v4 = vpop.f32.mrb[4].mxu0 }
 0x877   : > { %1506 = vrot.lane.b32.xlu1 %v1498_v4, %s2388_s1  ;;  %v2254_v9 = vpop.f32.mrb[5].mxu0 }
 0x878   : > { %v1501_v34 = vpop.f32.mrb[6].mxu0 }
 0x879   : > { %v2255_v35 = vpop.f32.mrb[7].mxu0 }
 0x8d1   : > { %v1697_v8 = vpop.f32.mrb[8].mxu0 }
 0x8d2   : > { %1705 = vrot.lane.b32.xlu0 %v1697_v8, %s2391_s13  ;;  %v2266_v16 = vpop.f32.mrb[9].mxu0 }
 0x8d3   : > { %v1700_v36 = vpop.f32.mrb[10].mxu0 }
 0x8d4   : > { %v2267_v37 = vpop.f32.mrb[11].mxu0 }
 0x8d9   : > { %v1822_v39 = vpop.f32.mrb[12].mxu0 }
 0x8da   : > { %v2278_v40 = vpop.f32.mrb[13].mxu0  ;;  %1830 = vrot.lane.b32.xlu1 %v1822_v39, %s2392_s27  ;;  %v2146_v39 = vld [vmem:[%s2899_s9] ss:$0 sm:$0xff] }
 0x8db   : > { %v1825_v41 = vpop.f32.mrb[14].mxu0 }
 0x8dc   : > { %v2279_v43 = vpop.f32.mrb[15].mxu0 }
 0x8dd   : > { %v2147_v43 = vld [vmem:[%s2900_s10] ss:$0 sm:$0xff] }
 0x8e9   : > { %v1507_v45 = vpop.permute.xlu1 %1506 }
 0x8ea   : > { %v1509_v46 = vadd.f32 %v1507_v45, %v1504_v44 }
 0x8ec   : > { %1511 = vst.msk [vmem:[#allocation2] sm:$0xff] %vm1510_vm1, %v1509_v46 }
 0x8f3   : > { %v1703_v47 = vld [vmem:[#allocation2] sm:$0xff] }
 0x944   : > { %v1706_v48 = vpop.permute.xlu0 %1705 }
 0x945   : > { %v1708_v49 = vadd.f32 %v1706_v48, %v1703_v47 }
 0x947   : > { %1710 = vst.msk [vmem:[#allocation2] sm:$0xff] %vm1709_vm2, %v1708_v49 }
 0x94c   : > { %v1831_v50 = vpop.permute.xlu1 %1830 }
 0x94e   : > { %v1828_v51 = vld [vmem:[#allocation2] sm:$0xff] }
 0x94f   : > { %v1833_v19 = vadd.f32 %v1831_v50, %v1828_v51 }
 0x951   : > { %1835 = vst.msk [vmem:[#allocation2] sm:$0xff] %vm1834_vm3, %v1833_v19 }
 0x958   : > { %v1836_v0 = vld [vmem:[#allocation2] sm:$0xff] }
 0x959   : > { %1872 = vrot.lane.b32.xlu1 %v1836_v0, %s2394_s2  ;;  %1852 = vrot.lane.b32.xlu0 %v1836_v0, %s2393_s22  ;;  %v1837_v56 = vsel %vm1290_vm13, %v1836_v0, 0.0 }
 0x95d   : > { %1892 = vrot.lane.b32.xlu0 %v1836_v0, %s2395_s3 }
 0x9cb   : > { %v1873_v1 = vpop.permute.xlu1 %1872  ;;  %v1853_v52 = vpop.permute.xlu0 %1852 }
 0x9cc   : > { %v1875_v53 = vsel %vm1290_vm13, %v1873_v1, 0.0  ;;  %v1855_v54 = vsel %vm1290_vm13, %v1853_v52, 0.0 }
 0x9cd   : > { %1876 = vadd.xlane.f32.xlu0 %v1875_v53  ;;  %1856 = vadd.xlane.f32.xlu1 %v1855_v54 }
 0x9cf   : > { %v1893_v55 = vpop.permute.xlu0 %1892 }
 0x9d0   : > { %v1895_v5 = vsel %vm1290_vm13, %v1893_v55, 0.0 }
 0x9d1   : > { %1896 = vadd.xlane.f32.xlu0 %v1895_v5  ;;  %1838 = vadd.xlane.f32.xlu1 %v1837_v56 }
 0xa5a   : > { %v1857_v57 = vpop.xlane.xlu1 %1856  ;;  %v1877_v58 = vpop.xlane.xlu0 %1876 }
 0xa5b   : > { %v1858_v38 = vmul.f32 0.125, %v1857_v57  ;;  %v1878_v59 = vmul.f32 0.125, %v1877_v58 }
 0xa5d   : > { %v1859_v60 = vsub.f32 %v1836_v0, %v1858_v38  ;;  %v1879_v61 = vsub.f32 %v1836_v0, %v1878_v59 }
 0xa5e   : > { %v1897_v62 = vpop.xlane.xlu0 %1896  ;;  %v1839_v42 = vpop.xlane.xlu1 %1838 }
 0xa5f   : > { %v1898_v63 = vmul.f32 0.125, %v1897_v62  ;;  %v1860_v2 = vmul.f32 %v1859_v60, %v1859_v60  ;;  %v1880_v10 = vmul.f32 %v1879_v61, %v1879_v61  ;;  %v1841_v13 = vmul.f32 0.125, %v1839_v42 }
 0xa61   : > { %v1899_v11 = vsub.f32 %v1836_v0, %v1898_v63  ;;  %1862 = vrot.lane.b32.xlu0 %v1860_v2, %s2393_s22  ;;  %1882 = vrot.lane.b32.xlu1 %v1880_v10, %s2394_s2  ;;  %v1842_v14 = vsub.f32 %v1836_v0, %v1841_v13 }
 0xa63   : > { %v1900_v12 = vmul.f32 %v1899_v11, %v1899_v11  ;;  %v1843_v15 = vmul.f32 %v1842_v14, %v1842_v14 }
 0xa65   : > { %1902 = vrot.lane.b32.xlu1 %v1900_v12, %s2395_s3  ;;  %v1844_v17 = vsel %vm1290_vm13, %v1843_v15, 0.0 }
 0xa80   : > { %1845 = vadd.xlane.f32.xlu0 %v1844_v17 }
 0xad3   : > { %v1863_v18 = vpop.permute.xlu0 %1862  ;;  %v1883_v20 = vpop.permute.xlu1 %1882 }
 0xad4   : > { %v1865_v21 = vsel %vm1290_vm13, %v1863_v18, 0.0  ;;  %v1885_v22 = vsel %vm1290_vm13, %v1883_v20, 0.0 }
 0xad5   : > { %1866 = vadd.xlane.f32.xlu1 %v1865_v21  ;;  %1886 = vadd.xlane.f32.xlu0 %v1885_v22 }
 0xad7   : > { %v1903_v23 = vpop.permute.xlu1 %1902 }
 0xad8   : > { %v1905_v24 = vsel %vm1290_vm13, %v1903_v23, 0.0 }
 0xad9   : > { %1906 = vadd.xlane.f32.xlu0 %v1905_v24 }
 0xb0d   : > { %v1846_v25 = vpop.xlane.xlu0 %1845 }
 0xb0e   : > { %v1847_v26 = vmul.f32 0.125, %v1846_v25 }
 0xb10   : > { %v1848_v3 = vadd.f32 1e-05, %v1847_v26 }
 0xb12   : > { %2336 = vrsqrt.f32 %v1848_v3 }
 0xb1c   : > { %v2337_v4 = vpop.eup %2336 }
 0xb1d   : > { %v1850_v35 = vmul.f32 %v2337_v4, %v1842_v14 }
 0xb62   : > { %v1887_v7 = vpop.xlane.xlu0 %1886  ;;  %v1867_v27 = vpop.xlane.xlu1 %1866 }
 0xb63   : > { %v1888_v6 = vmul.f32 0.125, %v1887_v7  ;;  %v1868_v28 = vmul.f32 0.125, %v1867_v27 }
 0xb65   : > { %v1889_v29 = vadd.f32 1e-05, %v1888_v6  ;;  %v1869_v30 = vadd.f32 1e-05, %v1868_v28 }
 0xb66   : > { %v1907_v31 = vpop.xlane.xlu0 %1906 }
 0xb67   : > { %2338 = vrsqrt.f32 %v1889_v29  ;;  %v1908_v32 = vmul.f32 0.125, %v1907_v31 }
 0xb68   : > { %2340 = vrsqrt.f32 %v1869_v30 }
 0xb69   : > { %v1909_v33 = vadd.f32 1e-05, %v1908_v32 }
 0xb6b   : > { %2342 = vrsqrt.f32 %v1909_v33 }
 0xb71   : > { %v2339_v9 = vpop.eup %2338 }
 0xb72   : > { %v2341_v34 = vpop.eup %2340  ;;  %v1891_v8 = vmul.f32 %v2339_v9, %v1879_v61 }
 0xb73   : > { %v1871_v16 = vmul.f32 %v2341_v34, %v1859_v60 }
 0xb75   : > { %v2343_v36 = vpop.eup %2342  ;;  %v1912_v37 = vsel %vm1290_vm13, %v1850_v35, %v1871_v16 }
 0xb76   : > { %v1911_v40 = vmul.f32 %v2343_v36, %v1899_v11  ;;  %v1913_v41 = vsel %vm1338_vm0, %v1912_v37, %v1891_v8 }
 0xb78   : > { %v1915_v44 = vsel %vm1914_vm4, %v1913_v41, %v1911_v40 }
 0xb79   : > { %v1923_v45 = vmul.f32 %v2146_v39, %v1915_v44 }
 0xb7b   : > { %v1931_v46 = vadd.f32 %v2147_v43, %v1923_v45 }
 0xb7d   : > { %v1932_v47 = vpack.c.bf16 %v1931_v46, %v1931_v46 }
 0xb7f   : > { %1934 = vst.msk [vmem:[%s2535_s25] sm:$0xf] %vm1933_vm5, %v1932_v47 }
 0xb80 PF: > { %s23_s23 = sadd.s32 1, %s2366_s23   ;;  %s2909_s21 = sld [smem:[#allocation6_spill]] }
 0xb81   : > { %p20_p10 = scmp.ge.s32.totalorder %s23_s23, 4   ;;  %s2910_s22 = sld [smem:[#allocation7_spill]] }
 0xb83   :  { %22 = sbr.rel (!%p20_p10) target bundleno = 5 (0x5), region = 116 }

</bundles_post_ra>
